<compile_context>
chip_gen: v7x
topology: tpu7x:2x2x1
jax: 0.10.0
libtpu: 0.0.40
codegen_flags: <defaults>
</compile_context>

<pallas_src>
import jax
import jax.numpy as jnp
import numpy as np
from jax.experimental import pallas as pl
from jax.experimental.pallas import tpu as pltpu

IN_CHANNELS = 32
OUT_CHANNELS = 64
KERNEL_SIZE = 3
STRIDE = 5
PADDING = 1
DILATION = 2


def _make_kernel(rows_per_step, W_in, C_out, KH, stride, dilation):
    row_width = stride * C_out                       # 320 lanes per slab row
    content_rows = {kh * dilation for kh in range(KH)}   # {0, 2, 4}

    def kernel(x_ref, w_ref, o_ref):
        # x_ref: (rows_per_step, W_in, C_in)                 bf16
        # w_ref: (KH, C_in, stride*C_out)                    bf16 (kw taps at
        #        lane kw*dilation*C_out, zeros elsewhere)
        # o_ref: (rows_per_step*stride, W_in, stride*C_out)  f32 slab rows
        zrow = jnp.zeros((W_in, row_width), jnp.float32)
        for r in range(rows_per_step):
            x_r = x_ref[r]                           # (W_in, C_in)
            # Content rows: one MXU dot per kernel row -> full 320-wide row
            # (kw interleave + zeros come from the fused weight).
            for kh in range(KH):
                o_ref[r * stride + kh * dilation] = jnp.dot(
                    x_r, w_ref[kh], preferred_element_type=jnp.float32)
            # Rows of the stride cell no tap reaches are genuinely zero.
            for hres in range(stride):
                if hres not in content_rows:
                    o_ref[r * stride + hres] = zrow

    return kernel


def _fuse_weights(w, stride, dilation):
    """w: (C_in, C_out, KH, KW) -> (KH, C_in, stride*C_out) with tap kw placed
    at lane offset kw*dilation*C_out and zeros elsewhere."""
    C_in, C_out, KH, KW = w.shape
    wf = jnp.zeros((KH, C_in, stride * C_out), w.dtype)
    for kh in range(KH):
        for kw in range(KW):
            off = kw * dilation * C_out
            wf = wf.at[kh, :, off:off + C_out].set(w[:, :, kh, kw])
    return wf


def _rows_per_step(R, W_in, C_out, stride):
    """Input rows handled per grid step: f32 output block <= ~8 MiB, at most 8
    rows, >=2 grid steps when possible (v7x megacore), prefer divisors of R."""
    per_row_bytes = stride * W_in * stride * C_out * 4
    budget = 8 * 1024 * 1024
    rh = int(max(1, min(8, budget // per_row_bytes)))
    if R >= 2:
        rh = min(rh, max(1, R // 2))
    while rh > 1 and R % rh != 0:
        rh -= 1
    return rh


def conv_transpose2d_pallas(x, w, *, stride=STRIDE, padding=PADDING, dilation=DILATION):
    """x: (N, C_in, H_in, W_in) f32 NCHW.  w: (C_in, C_out, KH, KW) f32.
    Returns (N, C_out, H_out, W_out), matching nn.ConvTranspose2d(bias=False)."""
    N, C_in, H_in, W_in = x.shape
    C_in_w, C_out, KH, KW = w.shape
    assert C_in == C_in_w
    H_out = (H_in - 1) * stride - 2 * padding + dilation * (KH - 1) + 1
    W_out = (W_in - 1) * stride - 2 * padding + dilation * (KW - 1) + 1

    # Scatter-free placement requires non-overlapping taps inside one stride
    # cell and a pure border crop; true for this module's fixed parameters.
    assert dilation * (KH - 1) < stride and dilation * (KW - 1) < stride
    assert 0 <= padding
    assert padding + H_out <= H_in * stride and padding + W_out <= W_in * stride

    R = N * H_in
    rh = _rows_per_step(R, W_in, C_out, stride)
    grid = (pl.cdiv(R, rh),)

    # Tiny input-side prep (<<2% of total bytes): NCHW -> per-row NHWC matrix,
    # bf16 cast; fused, zero-interleaved weight (also bf16).
    x_rows = jnp.transpose(x, (0, 2, 3, 1)).reshape(R, W_in, C_in).astype(jnp.bfloat16)
    w_fused = _fuse_weights(w, stride, dilation).astype(jnp.bfloat16)

    kernel = _make_kernel(rh, W_in, C_out, KH, stride, dilation)

    slab = pl.pallas_call(
        kernel,
        out_shape=jax.ShapeDtypeStruct((R * stride, W_in, stride * C_out), jnp.float32),
        grid_spec=pltpu.PrefetchScalarGridSpec(
            num_scalar_prefetch=0,
            grid=grid,
            in_specs=[
                pl.BlockSpec((rh, W_in, C_in), lambda i: (i, 0, 0)),
                # Weights: constant index map -> stay resident across steps.
                pl.BlockSpec((KH, C_in, stride * C_out), lambda i: (0, 0, 0)),
            ],
            out_specs=pl.BlockSpec((rh * stride, W_in, stride * C_out),
                                   lambda i: (i, 0, 0)),
        ),
        compiler_params=pltpu.CompilerParams(
            dimension_semantics=("parallel",),
            vmem_limit_bytes=40 * 1024 * 1024,
        ),
    )(x_rows, w_fused)

    # slab is already the full un-cropped NHWC output (metadata-only reshape):
    # (N*H_in*stride, W_in, stride*C_out) == (N, H_in*stride, W_in*stride, C_out)
    full = slab.reshape(N, H_in * stride, W_in * stride, C_out)
    # Remaining XLA work: border crop + NHWC->NCHW (fuses into one copy pass).
    # TODO(synk): emitting cropped NCHW directly needs element-level lane
    # interleave along W inside the kernel; left to XLA.
    out = full[:, padding:padding + H_out, padding:padding + W_out, :]
    return jnp.transpose(out, (0, 3, 1, 2))


def conv_transpose2d_ref(x, w, *, stride=STRIDE, padding=PADDING, dilation=DILATION):
    """Reference via lax.conv_general_dilated (transposed-conv identity)."""
    _, _, KH, KW = w.shape
    w_flip = jnp.transpose(w, (1, 0, 2, 3))[:, :, ::-1, ::-1]  # (O, I, kh, kw)
    pad_h = dilation * (KH - 1) - padding
    pad_w = dilation * (KW - 1) - padding
    return jax.lax.conv_general_dilated(
        x, w_flip,
        window_strides=(1, 1),
        padding=[(pad_h, pad_h), (pad_w, pad_w)],
        lhs_dilation=(stride, stride),
        rhs_dilation=(dilation, dilation),
        dimension_numbers=("NCHW", "OIHW", "NCHW"),
        precision=jax.lax.Precision.HIGHEST,
    )


if __name__ == "__main__":
    key = jax.random.PRNGKey(0)
    kx, kw = jax.random.split(key)

    # Small asymmetric spatial input; channels fixed by the module definition.
    N, H_in, W_in = 2, 8, 6
    x = jax.random.normal(kx, (N, IN_CHANNELS, H_in, W_in), jnp.float32)
    w = 0.05 * jax.random.normal(
        kw, (IN_CHANNELS, OUT_CHANNELS, KERNEL_SIZE, KERNEL_SIZE), jnp.float32
    )

    fn = jax.jit(conv_transpose2d_pallas)
    out = jax.block_until_ready(fn(x, w))

    expected_shape = (
        N,
        OUT_CHANNELS,
        (H_in - 1) * STRIDE - 2 * PADDING + DILATION * (KERNEL_SIZE - 1) + 1,
        (W_in - 1) * STRIDE - 2 * PADDING + DILATION * (KERNEL_SIZE - 1) + 1,
    )
    assert out.shape == expected_shape, (out.shape, expected_shape)

    ref = jax.block_until_ready(conv_transpose2d_ref(x, w))
    # Tolerance covers bf16 MXU ingestion (same numerics as default-precision
    # f32 dot); genuine layout/offset bugs would produce O(0.3) errors.
    np.testing.assert_allclose(np.asarray(out), np.asarray(ref), rtol=2e-2, atol=2e-2)

    print("KERNEL_OK")
</pallas_src>

<mosaic_0001>
module attributes {stable_mosaic.version = 11 : i64} {
  func.func @kernel(%arg0: i32, %arg1: memref<8x6x32xbf16, #tpu.memory_space<vmem>>, %arg2: memref<3x32x320xbf16, #tpu.memory_space<vmem>>, %arg3: memref<40x6x320xf32, #tpu.memory_space<vmem>>) attributes {dimension_semantics = [#tpu.dimension_semantics<parallel>], iteration_bounds = array<i64: 2>, scalar_prefetch = 0 : i64, scratch_operands = 0 : i64, tpu.core_type = #tpu.core_type<tc>, window_params = [{transform_indices = @transform_0, window_bounds = array<i64: 8, 6, 32>}, {pipeline_mode = #tpu.pipeline_mode<synchronous>, transform_indices = @transform_1, window_bounds = array<i64: 3, 32, 320>}, {transform_indices = @transform_2, window_bounds = array<i64: 40, 6, 320>}]} {
    %cst = arith.constant 0.000000e+00 : f32
    %0 = vector.broadcast %cst : f32 to vector<6x320xf32>
    %c0 = arith.constant 0 : index
    %c0_0 = arith.constant 0 : index
    %c0_1 = arith.constant 0 : index
    %1 = vector.load %arg1[%c0, %c0_0, %c0_1] : memref<8x6x32xbf16, #tpu.memory_space<vmem>>, vector<1x6x32xbf16>
    %2 = vector.shape_cast %1 : vector<1x6x32xbf16> to vector<6x32xbf16>
    %c0_2 = arith.constant 0 : index
    %c0_3 = arith.constant 0 : index
    %c0_4 = arith.constant 0 : index
    %3 = vector.load %arg2[%c0_2, %c0_3, %c0_4] : memref<3x32x320xbf16, #tpu.memory_space<vmem>>, vector<1x32x320xbf16>
    %4 = vector.shape_cast %3 : vector<1x32x320xbf16> to vector<32x320xbf16>
    %cst_5 = arith.constant dense<0.000000e+00> : vector<6x320xf32>
    %5 = tpu.matmul %2, %4, %cst_5 {dimension_numbers = #tpu.dot_dimension_numbers<[1], [0], [0], [1], [0, 0, 1, 1], [], []>} : vector<6x32xbf16>, vector<32x320xbf16>, vector<6x320xf32> -> vector<6x320xf32>
    %c0_6 = arith.constant 0 : index
    %c0_7 = arith.constant 0 : index
    %c0_8 = arith.constant 0 : index
    %6 = vector.load %arg3[%c0_6, %c0_7, %c0_8] : memref<40x6x320xf32, #tpu.memory_space<vmem>>, vector<1x6x320xf32>
    %7 = vector.shape_cast %6 : vector<1x6x320xf32> to vector<6x320xf32>
    %8 = vector.shape_cast %5 : vector<6x320xf32> to vector<1x6x320xf32>
    tpu.vector_store %arg3[%c0_6, %c0_7, %c0_8], %8 {strides = array<i32>} : memref<40x6x320xf32, #tpu.memory_space<vmem>>, vector<1x6x320xf32>,
    %c1 = arith.constant 1 : index
    %c0_9 = arith.constant 0 : index
    %c0_10 = arith.constant 0 : index
    %9 = vector.load %arg2[%c1, %c0_9, %c0_10] : memref<3x32x320xbf16, #tpu.memory_space<vmem>>, vector<1x32x320xbf16>
    %10 = vector.shape_cast %9 : vector<1x32x320xbf16> to vector<32x320xbf16>
    %cst_11 = arith.constant dense<0.000000e+00> : vector<6x320xf32>
    %11 = tpu.matmul %2, %10, %cst_11 {dimension_numbers = #tpu.dot_dimension_numbers<[1], [0], [0], [1], [0, 0, 1, 1], [], []>} : vector<6x32xbf16>, vector<32x320xbf16>, vector<6x320xf32> -> vector<6x320xf32>
    %c2 = arith.constant 2 : index
    %c0_12 = arith.constant 0 : index
    %c0_13 = arith.constant 0 : index
    %12 = vector.load %arg3[%c2, %c0_12, %c0_13] : memref<40x6x320xf32, #tpu.memory_space<vmem>>, vector<1x6x320xf32>
    %13 = vector.shape_cast %12 : vector<1x6x320xf32> to vector<6x320xf32>
    %14 = vector.shape_cast %11 : vector<6x320xf32> to vector<1x6x320xf32>
    tpu.vector_store %arg3[%c2, %c0_12, %c0_13], %14 {strides = array<i32>} : memref<40x6x320xf32, #tpu.memory_space<vmem>>, vector<1x6x320xf32>,
    %c2_14 = arith.constant 2 : index
    %c0_15 = arith.constant 0 : index
    %c0_16 = arith.constant 0 : index
    %15 = vector.load %arg2[%c2_14, %c0_15, %c0_16] : memref<3x32x320xbf16, #tpu.memory_space<vmem>>, vector<1x32x320xbf16>
    %16 = vector.shape_cast %15 : vector<1x32x320xbf16> to vector<32x320xbf16>
    %cst_17 = arith.constant dense<0.000000e+00> : vector<6x320xf32>
    %17 = tpu.matmul %2, %16, %cst_17 {dimension_numbers = #tpu.dot_dimension_numbers<[1], [0], [0], [1], [0, 0, 1, 1], [], []>} : vector<6x32xbf16>, vector<32x320xbf16>, vector<6x320xf32> -> vector<6x320xf32>
    %c4 = arith.constant 4 : index
    %c0_18 = arith.constant 0 : index
    %c0_19 = arith.constant 0 : index
    %18 = vector.load %arg3[%c4, %c0_18, %c0_19] : memref<40x6x320xf32, #tpu.memory_space<vmem>>, vector<1x6x320xf32>
    %19 = vector.shape_cast %18 : vector<1x6x320xf32> to vector<6x320xf32>
    %20 = vector.shape_cast %17 : vector<6x320xf32> to vector<1x6x320xf32>
    tpu.vector_store %arg3[%c4, %c0_18, %c0_19], %20 {strides = array<i32>} : memref<40x6x320xf32, #tpu.memory_space<vmem>>, vector<1x6x320xf32>,
    %c1_20 = arith.constant 1 : index
    %c0_21 = arith.constant 0 : index
    %c0_22 = arith.constant 0 : index
    %21 = vector.load %arg3[%c1_20, %c0_21, %c0_22] : memref<40x6x320xf32, #tpu.memory_space<vmem>>, vector<1x6x320xf32>
    %22 = vector.shape_cast %21 : vector<1x6x320xf32> to vector<6x320xf32>
    %23 = vector.shape_cast %0 : vector<6x320xf32> to vector<1x6x320xf32>
    tpu.vector_store %arg3[%c1_20, %c0_21, %c0_22], %23 {strides = array<i32>} : memref<40x6x320xf32, #tpu.memory_space<vmem>>, vector<1x6x320xf32>,
    %c3 = arith.constant 3 : index
    %c0_23 = arith.constant 0 : index
    %c0_24 = arith.constant 0 : index
    %24 = vector.load %arg3[%c3, %c0_23, %c0_24] : memref<40x6x320xf32, #tpu.memory_space<vmem>>, vector<1x6x320xf32>
    %25 = vector.shape_cast %24 : vector<1x6x320xf32> to vector<6x320xf32>
    %26 = vector.shape_cast %0 : vector<6x320xf32> to vector<1x6x320xf32>
    tpu.vector_store %arg3[%c3, %c0_23, %c0_24], %26 {strides = array<i32>} : memref<40x6x320xf32, #tpu.memory_space<vmem>>, vector<1x6x320xf32>,
    %c1_25 = arith.constant 1 : index
    %c0_26 = arith.constant 0 : index
    %c0_27 = arith.constant 0 : index
    %27 = vector.load %arg1[%c1_25, %c0_26, %c0_27] : memref<8x6x32xbf16, #tpu.memory_space<vmem>>, vector<1x6x32xbf16>
    %28 = vector.shape_cast %27 : vector<1x6x32xbf16> to vector<6x32xbf16>
    %c0_28 = arith.constant 0 : index
    %c0_29 = arith.constant 0 : index
    %c0_30 = arith.constant 0 : index
    %29 = vector.load %arg2[%c0_28, %c0_29, %c0_30] : memref<3x32x320xbf16, #tpu.memory_space<vmem>>, vector<1x32x320xbf16>
    %30 = vector.shape_cast %29 : vector<1x32x320xbf16> to vector<32x320xbf16>
    %cst_31 = arith.constant dense<0.000000e+00> : vector<6x320xf32>
    %31 = tpu.matmul %28, %30, %cst_31 {dimension_numbers = #tpu.dot_dimension_numbers<[1], [0], [0], [1], [0, 0, 1, 1], [], []>} : vector<6x32xbf16>, vector<32x320xbf16>, vector<6x320xf32> -> vector<6x320xf32>
    %c5 = arith.constant 5 : index
    %c0_32 = arith.constant 0 : index
    %c0_33 = arith.constant 0 : index
    %32 = vector.load %arg3[%c5, %c0_32, %c0_33] : memref<40x6x320xf32, #tpu.memory_space<vmem>>, vector<1x6x320xf32>
    %33 = vector.shape_cast %32 : vector<1x6x320xf32> to vector<6x320xf32>
    %34 = vector.shape_cast %31 : vector<6x320xf32> to vector<1x6x320xf32>
    tpu.vector_store %arg3[%c5, %c0_32, %c0_33], %34 {strides = array<i32>} : memref<40x6x320xf32, #tpu.memory_space<vmem>>, vector<1x6x320xf32>,
    %c1_34 = arith.constant 1 : index
    %c0_35 = arith.constant 0 : index
    %c0_36 = arith.constant 0 : index
    %35 = vector.load %arg2[%c1_34, %c0_35, %c0_36] : memref<3x32x320xbf16, #tpu.memory_space<vmem>>, vector<1x32x320xbf16>
    %36 = vector.shape_cast %35 : vector<1x32x320xbf16> to vector<32x320xbf16>
    %cst_37 = arith.constant dense<0.000000e+00> : vector<6x320xf32>
    %37 = tpu.matmul %28, %36, %cst_37 {dimension_numbers = #tpu.dot_dimension_numbers<[1], [0], [0], [1], [0, 0, 1, 1], [], []>} : vector<6x32xbf16>, vector<32x320xbf16>, vector<6x320xf32> -> vector<6x320xf32>
    %c7 = arith.constant 7 : index
    %c0_38 = arith.constant 0 : index
    %c0_39 = arith.constant 0 : index
    %38 = vector.load %arg3[%c7, %c0_38, %c0_39] : memref<40x6x320xf32, #tpu.memory_space<vmem>>, vector<1x6x320xf32>
    %39 = vector.shape_cast %38 : vector<1x6x320xf32> to vector<6x320xf32>
    %40 = vector.shape_cast %37 : vector<6x320xf32> to vector<1x6x320xf32>
    tpu.vector_store %arg3[%c7, %c0_38, %c0_39], %40 {strides = array<i32>} : memref<40x6x320xf32, #tpu.memory_space<vmem>>, vector<1x6x320xf32>,
    %c2_40 = arith.constant 2 : index
    %c0_41 = arith.constant 0 : index
    %c0_42 = arith.constant 0 : index
    %41 = vector.load %arg2[%c2_40, %c0_41, %c0_42] : memref<3x32x320xbf16, #tpu.memory_space<vmem>>, vector<1x32x320xbf16>
    %42 = vector.shape_cast %41 : vector<1x32x320xbf16> to vector<32x320xbf16>
    %cst_43 = arith.constant dense<0.000000e+00> : vector<6x320xf32>
    %43 = tpu.matmul %28, %42, %cst_43 {dimension_numbers = #tpu.dot_dimension_numbers<[1], [0], [0], [1], [0, 0, 1, 1], [], []>} : vector<6x32xbf16>, vector<32x320xbf16>, vector<6x320xf32> -> vector<6x320xf32>
    %c9 = arith.constant 9 : index
    %c0_44 = arith.constant 0 : index
    %c0_45 = arith.constant 0 : index
    %44 = vector.load %arg3[%c9, %c0_44, %c0_45] : memref<40x6x320xf32, #tpu.memory_space<vmem>>, vector<1x6x320xf32>
    %45 = vector.shape_cast %44 : vector<1x6x320xf32> to vector<6x320xf32>
    %46 = vector.shape_cast %43 : vector<6x320xf32> to vector<1x6x320xf32>
    tpu.vector_store %arg3[%c9, %c0_44, %c0_45], %46 {strides = array<i32>} : memref<40x6x320xf32, #tpu.memory_space<vmem>>, vector<1x6x320xf32>,
    %c6 = arith.constant 6 : index
    %c0_46 = arith.constant 0 : index
    %c0_47 = arith.constant 0 : index
    %47 = vector.load %arg3[%c6, %c0_46, %c0_47] : memref<40x6x320xf32, #tpu.memory_space<vmem>>, vector<1x6x320xf32>
    %48 = vector.shape_cast %47 : vector<1x6x320xf32> to vector<6x320xf32>
    %49 = vector.shape_cast %0 : vector<6x320xf32> to vector<1x6x320xf32>
    tpu.vector_store %arg3[%c6, %c0_46, %c0_47], %49 {strides = array<i32>} : memref<40x6x320xf32, #tpu.memory_space<vmem>>, vector<1x6x320xf32>,
    %c8 = arith.constant 8 : index
    %c0_48 = arith.constant 0 : index
    %c0_49 = arith.constant 0 : index
    %50 = vector.load %arg3[%c8, %c0_48, %c0_49] : memref<40x6x320xf32, #tpu.memory_space<vmem>>, vector<1x6x320xf32>
    %51 = vector.shape_cast %50 : vector<1x6x320xf32> to vector<6x320xf32>
    %52 = vector.shape_cast %0 : vector<6x320xf32> to vector<1x6x320xf32>
    tpu.vector_store %arg3[%c8, %c0_48, %c0_49], %52 {strides = array<i32>} : memref<40x6x320xf32, #tpu.memory_space<vmem>>, vector<1x6x320xf32>,
    %c2_50 = arith.constant 2 : index
    %c0_51 = arith.constant 0 : index
    %c0_52 = arith.constant 0 : index
    %53 = vector.load %arg1[%c2_50, %c0_51, %c0_52] : memref<8x6x32xbf16, #tpu.memory_space<vmem>>, vector<1x6x32xbf16>
    %54 = vector.shape_cast %53 : vector<1x6x32xbf16> to vector<6x32xbf16>
    %c0_53 = arith.constant 0 : index
    %c0_54 = arith.constant 0 : index
    %c0_55 = arith.constant 0 : index
    %55 = vector.load %arg2[%c0_53, %c0_54, %c0_55] : memref<3x32x320xbf16, #tpu.memory_space<vmem>>, vector<1x32x320xbf16>
    %56 = vector.shape_cast %55 : vector<1x32x320xbf16> to vector<32x320xbf16>
    %cst_56 = arith.constant dense<0.000000e+00> : vector<6x320xf32>
    %57 = tpu.matmul %54, %56, %cst_56 {dimension_numbers = #tpu.dot_dimension_numbers<[1], [0], [0], [1], [0, 0, 1, 1], [], []>} : vector<6x32xbf16>, vector<32x320xbf16>, vector<6x320xf32> -> vector<6x320xf32>
    %c10 = arith.constant 10 : index
    %c0_57 = arith.constant 0 : index
    %c0_58 = arith.constant 0 : index
    %58 = vector.load %arg3[%c10, %c0_57, %c0_58] : memref<40x6x320xf32, #tpu.memory_space<vmem>>, vector<1x6x320xf32>
    %59 = vector.shape_cast %58 : vector<1x6x320xf32> to vector<6x320xf32>
    %60 = vector.shape_cast %57 : vector<6x320xf32> to vector<1x6x320xf32>
    tpu.vector_store %arg3[%c10, %c0_57, %c0_58], %60 {strides = array<i32>} : memref<40x6x320xf32, #tpu.memory_space<vmem>>, vector<1x6x320xf32>,
    %c1_59 = arith.constant 1 : index
    %c0_60 = arith.constant 0 : index
    %c0_61 = arith.constant 0 : index
    %61 = vector.load %arg2[%c1_59, %c0_60, %c0_61] : memref<3x32x320xbf16, #tpu.memory_space<vmem>>, vector<1x32x320xbf16>
    %62 = vector.shape_cast %61 : vector<1x32x320xbf16> to vector<32x320xbf16>
    %cst_62 = arith.constant dense<0.000000e+00> : vector<6x320xf32>
    %63 = tpu.matmul %54, %62, %cst_62 {dimension_numbers = #tpu.dot_dimension_numbers<[1], [0], [0], [1], [0, 0, 1, 1], [], []>} : vector<6x32xbf16>, vector<32x320xbf16>, vector<6x320xf32> -> vector<6x320xf32>
    %c12 = arith.constant 12 : index
    %c0_63 = arith.constant 0 : index
    %c0_64 = arith.constant 0 : index
    %64 = vector.load %arg3[%c12, %c0_63, %c0_64] : memref<40x6x320xf32, #tpu.memory_space<vmem>>, vector<1x6x320xf32>
    %65 = vector.shape_cast %64 : vector<1x6x320xf32> to vector<6x320xf32>
    %66 = vector.shape_cast %63 : vector<6x320xf32> to vector<1x6x320xf32>
    tpu.vector_store %arg3[%c12, %c0_63, %c0_64], %66 {strides = array<i32>} : memref<40x6x320xf32, #tpu.memory_space<vmem>>, vector<1x6x320xf32>,
    %c2_65 = arith.constant 2 : index
    %c0_66 = arith.constant 0 : index
    %c0_67 = arith.constant 0 : index
    %67 = vector.load %arg2[%c2_65, %c0_66, %c0_67] : memref<3x32x320xbf16, #tpu.memory_space<vmem>>, vector<1x32x320xbf16>
    %68 = vector.shape_cast %67 : vector<1x32x320xbf16> to vector<32x320xbf16>
    %cst_68 = arith.constant dense<0.000000e+00> : vector<6x320xf32>
    %69 = tpu.matmul %54, %68, %cst_68 {dimension_numbers = #tpu.dot_dimension_numbers<[1], [0], [0], [1], [0, 0, 1, 1], [], []>} : vector<6x32xbf16>, vector<32x320xbf16>, vector<6x320xf32> -> vector<6x320xf32>
    %c14 = arith.constant 14 : index
    %c0_69 = arith.constant 0 : index
    %c0_70 = arith.constant 0 : index
    %70 = vector.load %arg3[%c14, %c0_69, %c0_70] : memref<40x6x320xf32, #tpu.memory_space<vmem>>, vector<1x6x320xf32>
    %71 = vector.shape_cast %70 : vector<1x6x320xf32> to vector<6x320xf32>
    %72 = vector.shape_cast %69 : vector<6x320xf32> to vector<1x6x320xf32>
    tpu.vector_store %arg3[%c14, %c0_69, %c0_70], %72 {strides = array<i32>} : memref<40x6x320xf32, #tpu.memory_space<vmem>>, vector<1x6x320xf32>,
    %c11 = arith.constant 11 : index
    %c0_71 = arith.constant 0 : index
    %c0_72 = arith.constant 0 : index
    %73 = vector.load %arg3[%c11, %c0_71, %c0_72] : memref<40x6x320xf32, #tpu.memory_space<vmem>>, vector<1x6x320xf32>
    %74 = vector.shape_cast %73 : vector<1x6x320xf32> to vector<6x320xf32>
    %75 = vector.shape_cast %0 : vector<6x320xf32> to vector<1x6x320xf32>
    tpu.vector_store %arg3[%c11, %c0_71, %c0_72], %75 {strides = array<i32>} : memref<40x6x320xf32, #tpu.memory_space<vmem>>, vector<1x6x320xf32>,
    %c13 = arith.constant 13 : index
    %c0_73 = arith.constant 0 : index
    %c0_74 = arith.constant 0 : index
    %76 = vector.load %arg3[%c13, %c0_73, %c0_74] : memref<40x6x320xf32, #tpu.memory_space<vmem>>, vector<1x6x320xf32>
    %77 = vector.shape_cast %76 : vector<1x6x320xf32> to vector<6x320xf32>
    %78 = vector.shape_cast %0 : vector<6x320xf32> to vector<1x6x320xf32>
    tpu.vector_store %arg3[%c13, %c0_73, %c0_74], %78 {strides = array<i32>} : memref<40x6x320xf32, #tpu.memory_space<vmem>>, vector<1x6x320xf32>,
    %c3_75 = arith.constant 3 : index
    %c0_76 = arith.constant 0 : index
    %c0_77 = arith.constant 0 : index
    %79 = vector.load %arg1[%c3_75, %c0_76, %c0_77] : memref<8x6x32xbf16, #tpu.memory_space<vmem>>, vector<1x6x32xbf16>
    %80 = vector.shape_cast %79 : vector<1x6x32xbf16> to vector<6x32xbf16>
    %c0_78 = arith.constant 0 : index
    %c0_79 = arith.constant 0 : index
    %c0_80 = arith.constant 0 : index
    %81 = vector.load %arg2[%c0_78, %c0_79, %c0_80] : memref<3x32x320xbf16, #tpu.memory_space<vmem>>, vector<1x32x320xbf16>
    %82 = vector.shape_cast %81 : vector<1x32x320xbf16> to vector<32x320xbf16>
    %cst_81 = arith.constant dense<0.000000e+00> : vector<6x320xf32>
    %83 = tpu.matmul %80, %82, %cst_81 {dimension_numbers = #tpu.dot_dimension_numbers<[1], [0], [0], [1], [0, 0, 1, 1], [], []>} : vector<6x32xbf16>, vector<32x320xbf16>, vector<6x320xf32> -> vector<6x320xf32>
    %c15 = arith.constant 15 : index
    %c0_82 = arith.constant 0 : index
    %c0_83 = arith.constant 0 : index
    %84 = vector.load %arg3[%c15, %c0_82, %c0_83] : memref<40x6x320xf32, #tpu.memory_space<vmem>>, vector<1x6x320xf32>
    %85 = vector.shape_cast %84 : vector<1x6x320xf32> to vector<6x320xf32>
    %86 = vector.shape_cast %83 : vector<6x320xf32> to vector<1x6x320xf32>
    tpu.vector_store %arg3[%c15, %c0_82, %c0_83], %86 {strides = array<i32>} : memref<40x6x320xf32, #tpu.memory_space<vmem>>, vector<1x6x320xf32>,
    %c1_84 = arith.constant 1 : index
    %c0_85 = arith.constant 0 : index
    %c0_86 = arith.constant 0 : index
    %87 = vector.load %arg2[%c1_84, %c0_85, %c0_86] : memref<3x32x320xbf16, #tpu.memory_space<vmem>>, vector<1x32x320xbf16>
    %88 = vector.shape_cast %87 : vector<1x32x320xbf16> to vector<32x320xbf16>
    %cst_87 = arith.constant dense<0.000000e+00> : vector<6x320xf32>
    %89 = tpu.matmul %80, %88, %cst_87 {dimension_numbers = #tpu.dot_dimension_numbers<[1], [0], [0], [1], [0, 0, 1, 1], [], []>} : vector<6x32xbf16>, vector<32x320xbf16>, vector<6x320xf32> -> vector<6x320xf32>
    %c17 = arith.constant 17 : index
    %c0_88 = arith.constant 0 : index
    %c0_89 = arith.constant 0 : index
    %90 = vector.load %arg3[%c17, %c0_88, %c0_89] : memref<40x6x320xf32, #tpu.memory_space<vmem>>, vector<1x6x320xf32>
    %91 = vector.shape_cast %90 : vector<1x6x320xf32> to vector<6x320xf32>
    %92 = vector.shape_cast %89 : vector<6x320xf32> to vector<1x6x320xf32>
    tpu.vector_store %arg3[%c17, %c0_88, %c0_89], %92 {strides = array<i32>} : memref<40x6x320xf32, #tpu.memory_space<vmem>>, vector<1x6x320xf32>,
    %c2_90 = arith.constant 2 : index
    %c0_91 = arith.constant 0 : index
    %c0_92 = arith.constant 0 : index
    %93 = vector.load %arg2[%c2_90, %c0_91, %c0_92] : memref<3x32x320xbf16, #tpu.memory_space<vmem>>, vector<1x32x320xbf16>
    %94 = vector.shape_cast %93 : vector<1x32x320xbf16> to vector<32x320xbf16>
    %cst_93 = arith.constant dense<0.000000e+00> : vector<6x320xf32>
    %95 = tpu.matmul %80, %94, %cst_93 {dimension_numbers = #tpu.dot_dimension_numbers<[1], [0], [0], [1], [0, 0, 1, 1], [], []>} : vector<6x32xbf16>, vector<32x320xbf16>, vector<6x320xf32> -> vector<6x320xf32>
    %c19 = arith.constant 19 : index
    %c0_94 = arith.constant 0 : index
    %c0_95 = arith.constant 0 : index
    %96 = vector.load %arg3[%c19, %c0_94, %c0_95] : memref<40x6x320xf32, #tpu.memory_space<vmem>>, vector<1x6x320xf32>
    %97 = vector.shape_cast %96 : vector<1x6x320xf32> to vector<6x320xf32>
    %98 = vector.shape_cast %95 : vector<6x320xf32> to vector<1x6x320xf32>
    tpu.vector_store %arg3[%c19, %c0_94, %c0_95], %98 {strides = array<i32>} : memref<40x6x320xf32, #tpu.memory_space<vmem>>, vector<1x6x320xf32>,
    %c16 = arith.constant 16 : index
    %c0_96 = arith.constant 0 : index
    %c0_97 = arith.constant 0 : index
    %99 = vector.load %arg3[%c16, %c0_96, %c0_97] : memref<40x6x320xf32, #tpu.memory_space<vmem>>, vector<1x6x320xf32>
    %100 = vector.shape_cast %99 : vector<1x6x320xf32> to vector<6x320xf32>
    %101 = vector.shape_cast %0 : vector<6x320xf32> to vector<1x6x320xf32>
    tpu.vector_store %arg3[%c16, %c0_96, %c0_97], %101 {strides = array<i32>} : memref<40x6x320xf32, #tpu.memory_space<vmem>>, vector<1x6x320xf32>,
    %c18 = arith.constant 18 : index
    %c0_98 = arith.constant 0 : index
    %c0_99 = arith.constant 0 : index
    %102 = vector.load %arg3[%c18, %c0_98, %c0_99] : memref<40x6x320xf32, #tpu.memory_space<vmem>>, vector<1x6x320xf32>
    %103 = vector.shape_cast %102 : vector<1x6x320xf32> to vector<6x320xf32>
    %104 = vector.shape_cast %0 : vector<6x320xf32> to vector<1x6x320xf32>
    tpu.vector_store %arg3[%c18, %c0_98, %c0_99], %104 {strides = array<i32>} : memref<40x6x320xf32, #tpu.memory_space<vmem>>, vector<1x6x320xf32>,
    %c4_100 = arith.constant 4 : index
    %c0_101 = arith.constant 0 : index
    %c0_102 = arith.constant 0 : index
    %105 = vector.load %arg1[%c4_100, %c0_101, %c0_102] : memref<8x6x32xbf16, #tpu.memory_space<vmem>>, vector<1x6x32xbf16>
    %106 = vector.shape_cast %105 : vector<1x6x32xbf16> to vector<6x32xbf16>
    %c0_103 = arith.constant 0 : index
    %c0_104 = arith.constant 0 : index
    %c0_105 = arith.constant 0 : index
    %107 = vector.load %arg2[%c0_103, %c0_104, %c0_105] : memref<3x32x320xbf16, #tpu.memory_space<vmem>>, vector<1x32x320xbf16>
    %108 = vector.shape_cast %107 : vector<1x32x320xbf16> to vector<32x320xbf16>
    %cst_106 = arith.constant dense<0.000000e+00> : vector<6x320xf32>
    %109 = tpu.matmul %106, %108, %cst_106 {dimension_numbers = #tpu.dot_dimension_numbers<[1], [0], [0], [1], [0, 0, 1, 1], [], []>} : vector<6x32xbf16>, vector<32x320xbf16>, vector<6x320xf32> -> vector<6x320xf32>
    %c20 = arith.constant 20 : index
    %c0_107 = arith.constant 0 : index
    %c0_108 = arith.constant 0 : index
    %110 = vector.load %arg3[%c20, %c0_107, %c0_108] : memref<40x6x320xf32, #tpu.memory_space<vmem>>, vector<1x6x320xf32>
    %111 = vector.shape_cast %110 : vector<1x6x320xf32> to vector<6x320xf32>
    %112 = vector.shape_cast %109 : vector<6x320xf32> to vector<1x6x320xf32>
    tpu.vector_store %arg3[%c20, %c0_107, %c0_108], %112 {strides = array<i32>} : memref<40x6x320xf32, #tpu.memory_space<vmem>>, vector<1x6x320xf32>,
    %c1_109 = arith.constant 1 : index
    %c0_110 = arith.constant 0 : index
    %c0_111 = arith.constant 0 : index
    %113 = vector.load %arg2[%c1_109, %c0_110, %c0_111] : memref<3x32x320xbf16, #tpu.memory_space<vmem>>, vector<1x32x320xbf16>
    %114 = vector.shape_cast %113 : vector<1x32x320xbf16> to vector<32x320xbf16>
    %cst_112 = arith.constant dense<0.000000e+00> : vector<6x320xf32>
    %115 = tpu.matmul %106, %114, %cst_112 {dimension_numbers = #tpu.dot_dimension_numbers<[1], [0], [0], [1], [0, 0, 1, 1], [], []>} : vector<6x32xbf16>, vector<32x320xbf16>, vector<6x320xf32> -> vector<6x320xf32>
    %c22 = arith.constant 22 : index
    %c0_113 = arith.constant 0 : index
    %c0_114 = arith.constant 0 : index
    %116 = vector.load %arg3[%c22, %c0_113, %c0_114] : memref<40x6x320xf32, #tpu.memory_space<vmem>>, vector<1x6x320xf32>
    %117 = vector.shape_cast %116 : vector<1x6x320xf32> to vector<6x320xf32>
    %118 = vector.shape_cast %115 : vector<6x320xf32> to vector<1x6x320xf32>
    tpu.vector_store %arg3[%c22, %c0_113, %c0_114], %118 {strides = array<i32>} : memref<40x6x320xf32, #tpu.memory_space<vmem>>, vector<1x6x320xf32>,
    %c2_115 = arith.constant 2 : index
    %c0_116 = arith.constant 0 : index
    %c0_117 = arith.constant 0 : index
    %119 = vector.load %arg2[%c2_115, %c0_116, %c0_117] : memref<3x32x320xbf16, #tpu.memory_space<vmem>>, vector<1x32x320xbf16>
    %120 = vector.shape_cast %119 : vector<1x32x320xbf16> to vector<32x320xbf16>
    %cst_118 = arith.constant dense<0.000000e+00> : vector<6x320xf32>
    %121 = tpu.matmul %106, %120, %cst_118 {dimension_numbers = #tpu.dot_dimension_numbers<[1], [0], [0], [1], [0, 0, 1, 1], [], []>} : vector<6x32xbf16>, vector<32x320xbf16>, vector<6x320xf32> -> vector<6x320xf32>
    %c24 = arith.constant 24 : index
    %c0_119 = arith.constant 0 : index
    %c0_120 = arith.constant 0 : index
    %122 = vector.load %arg3[%c24, %c0_119, %c0_120] : memref<40x6x320xf32, #tpu.memory_space<vmem>>, vector<1x6x320xf32>
    %123 = vector.shape_cast %122 : vector<1x6x320xf32> to vector<6x320xf32>
    %124 = vector.shape_cast %121 : vector<6x320xf32> to vector<1x6x320xf32>
    tpu.vector_store %arg3[%c24, %c0_119, %c0_120], %124 {strides = array<i32>} : memref<40x6x320xf32, #tpu.memory_space<vmem>>, vector<1x6x320xf32>,
    %c21 = arith.constant 21 : index
    %c0_121 = arith.constant 0 : index
    %c0_122 = arith.constant 0 : index
    %125 = vector.load %arg3[%c21, %c0_121, %c0_122] : memref<40x6x320xf32, #tpu.memory_space<vmem>>, vector<1x6x320xf32>
    %126 = vector.shape_cast %125 : vector<1x6x320xf32> to vector<6x320xf32>
    %127 = vector.shape_cast %0 : vector<6x320xf32> to vector<1x6x320xf32>
    tpu.vector_store %arg3[%c21, %c0_121, %c0_122], %127 {strides = array<i32>} : memref<40x6x320xf32, #tpu.memory_space<vmem>>, vector<1x6x320xf32>,
    %c23 = arith.constant 23 : index
    %c0_123 = arith.constant 0 : index
    %c0_124 = arith.constant 0 : index
    %128 = vector.load %arg3[%c23, %c0_123, %c0_124] : memref<40x6x320xf32, #tpu.memory_space<vmem>>, vector<1x6x320xf32>
    %129 = vector.shape_cast %128 : vector<1x6x320xf32> to vector<6x320xf32>
    %130 = vector.shape_cast %0 : vector<6x320xf32> to vector<1x6x320xf32>
    tpu.vector_store %arg3[%c23, %c0_123, %c0_124], %130 {strides = array<i32>} : memref<40x6x320xf32, #tpu.memory_space<vmem>>, vector<1x6x320xf32>,
    %c5_125 = arith.constant 5 : index
    %c0_126 = arith.constant 0 : index
    %c0_127 = arith.constant 0 : index
    %131 = vector.load %arg1[%c5_125, %c0_126, %c0_127] : memref<8x6x32xbf16, #tpu.memory_space<vmem>>, vector<1x6x32xbf16>
    %132 = vector.shape_cast %131 : vector<1x6x32xbf16> to vector<6x32xbf16>
    %c0_128 = arith.constant 0 : index
    %c0_129 = arith.constant 0 : index
    %c0_130 = arith.constant 0 : index
    %133 = vector.load %arg2[%c0_128, %c0_129, %c0_130] : memref<3x32x320xbf16, #tpu.memory_space<vmem>>, vector<1x32x320xbf16>
    %134 = vector.shape_cast %133 : vector<1x32x320xbf16> to vector<32x320xbf16>
    %cst_131 = arith.constant dense<0.000000e+00> : vector<6x320xf32>
    %135 = tpu.matmul %132, %134, %cst_131 {dimension_numbers = #tpu.dot_dimension_numbers<[1], [0], [0], [1], [0, 0, 1, 1], [], []>} : vector<6x32xbf16>, vector<32x320xbf16>, vector<6x320xf32> -> vector<6x320xf32>
    %c25 = arith.constant 25 : index
    %c0_132 = arith.constant 0 : index
    %c0_133 = arith.constant 0 : index
    %136 = vector.load %arg3[%c25, %c0_132, %c0_133] : memref<40x6x320xf32, #tpu.memory_space<vmem>>, vector<1x6x320xf32>
    %137 = vector.shape_cast %136 : vector<1x6x320xf32> to vector<6x320xf32>
    %138 = vector.shape_cast %135 : vector<6x320xf32> to vector<1x6x320xf32>
    tpu.vector_store %arg3[%c25, %c0_132, %c0_133], %138 {strides = array<i32>} : memref<40x6x320xf32, #tpu.memory_space<vmem>>, vector<1x6x320xf32>,
    %c1_134 = arith.constant 1 : index
    %c0_135 = arith.constant 0 : index
    %c0_136 = arith.constant 0 : index
    %139 = vector.load %arg2[%c1_134, %c0_135, %c0_136] : memref<3x32x320xbf16, #tpu.memory_space<vmem>>, vector<1x32x320xbf16>
    %140 = vector.shape_cast %139 : vector<1x32x320xbf16> to vector<32x320xbf16>
    %cst_137 = arith.constant dense<0.000000e+00> : vector<6x320xf32>
    %141 = tpu.matmul %132, %140, %cst_137 {dimension_numbers = #tpu.dot_dimension_numbers<[1], [0], [0], [1], [0, 0, 1, 1], [], []>} : vector<6x32xbf16>, vector<32x320xbf16>, vector<6x320xf32> -> vector<6x320xf32>
    %c27 = arith.constant 27 : index
    %c0_138 = arith.constant 0 : index
    %c0_139 = arith.constant 0 : index
    %142 = vector.load %arg3[%c27, %c0_138, %c0_139] : memref<40x6x320xf32, #tpu.memory_space<vmem>>, vector<1x6x320xf32>
    %143 = vector.shape_cast %142 : vector<1x6x320xf32> to vector<6x320xf32>
    %144 = vector.shape_cast %141 : vector<6x320xf32> to vector<1x6x320xf32>
    tpu.vector_store %arg3[%c27, %c0_138, %c0_139], %144 {strides = array<i32>} : memref<40x6x320xf32, #tpu.memory_space<vmem>>, vector<1x6x320xf32>,
    %c2_140 = arith.constant 2 : index
    %c0_141 = arith.constant 0 : index
    %c0_142 = arith.constant 0 : index
    %145 = vector.load %arg2[%c2_140, %c0_141, %c0_142] : memref<3x32x320xbf16, #tpu.memory_space<vmem>>, vector<1x32x320xbf16>
    %146 = vector.shape_cast %145 : vector<1x32x320xbf16> to vector<32x320xbf16>
    %cst_143 = arith.constant dense<0.000000e+00> : vector<6x320xf32>
    %147 = tpu.matmul %132, %146, %cst_143 {dimension_numbers = #tpu.dot_dimension_numbers<[1], [0], [0], [1], [0, 0, 1, 1], [], []>} : vector<6x32xbf16>, vector<32x320xbf16>, vector<6x320xf32> -> vector<6x320xf32>
    %c29 = arith.constant 29 : index
    %c0_144 = arith.constant 0 : index
    %c0_145 = arith.constant 0 : index
    %148 = vector.load %arg3[%c29, %c0_144, %c0_145] : memref<40x6x320xf32, #tpu.memory_space<vmem>>, vector<1x6x320xf32>
    %149 = vector.shape_cast %148 : vector<1x6x320xf32> to vector<6x320xf32>
    %150 = vector.shape_cast %147 : vector<6x320xf32> to vector<1x6x320xf32>
    tpu.vector_store %arg3[%c29, %c0_144, %c0_145], %150 {strides = array<i32>} : memref<40x6x320xf32, #tpu.memory_space<vmem>>, vector<1x6x320xf32>,
    %c26 = arith.constant 26 : index
    %c0_146 = arith.constant 0 : index
    %c0_147 = arith.constant 0 : index
    %151 = vector.load %arg3[%c26, %c0_146, %c0_147] : memref<40x6x320xf32, #tpu.memory_space<vmem>>, vector<1x6x320xf32>
    %152 = vector.shape_cast %151 : vector<1x6x320xf32> to vector<6x320xf32>
    %153 = vector.shape_cast %0 : vector<6x320xf32> to vector<1x6x320xf32>
    tpu.vector_store %arg3[%c26, %c0_146, %c0_147], %153 {strides = array<i32>} : memref<40x6x320xf32, #tpu.memory_space<vmem>>, vector<1x6x320xf32>,
    %c28 = arith.constant 28 : index
    %c0_148 = arith.constant 0 : index
    %c0_149 = arith.constant 0 : index
    %154 = vector.load %arg3[%c28, %c0_148, %c0_149] : memref<40x6x320xf32, #tpu.memory_space<vmem>>, vector<1x6x320xf32>
    %155 = vector.shape_cast %154 : vector<1x6x320xf32> to vector<6x320xf32>
    %156 = vector.shape_cast %0 : vector<6x320xf32> to vector<1x6x320xf32>
    tpu.vector_store %arg3[%c28, %c0_148, %c0_149], %156 {strides = array<i32>} : memref<40x6x320xf32, #tpu.memory_space<vmem>>, vector<1x6x320xf32>,
    %c6_150 = arith.constant 6 : index
    %c0_151 = arith.constant 0 : index
    %c0_152 = arith.constant 0 : index
    %157 = vector.load %arg1[%c6_150, %c0_151, %c0_152] : memref<8x6x32xbf16, #tpu.memory_space<vmem>>, vector<1x6x32xbf16>
    %158 = vector.shape_cast %157 : vector<1x6x32xbf16> to vector<6x32xbf16>
    %c0_153 = arith.constant 0 : index
    %c0_154 = arith.constant 0 : index
    %c0_155 = arith.constant 0 : index
    %159 = vector.load %arg2[%c0_153, %c0_154, %c0_155] : memref<3x32x320xbf16, #tpu.memory_space<vmem>>, vector<1x32x320xbf16>
    %160 = vector.shape_cast %159 : vector<1x32x320xbf16> to vector<32x320xbf16>
    %cst_156 = arith.constant dense<0.000000e+00> : vector<6x320xf32>
    %161 = tpu.matmul %158, %160, %cst_156 {dimension_numbers = #tpu.dot_dimension_numbers<[1], [0], [0], [1], [0, 0, 1, 1], [], []>} : vector<6x32xbf16>, vector<32x320xbf16>, vector<6x320xf32> -> vector<6x320xf32>
    %c30 = arith.constant 30 : index
    %c0_157 = arith.constant 0 : index
    %c0_158 = arith.constant 0 : index
    %162 = vector.load %arg3[%c30, %c0_157, %c0_158] : memref<40x6x320xf32, #tpu.memory_space<vmem>>, vector<1x6x320xf32>
    %163 = vector.shape_cast %162 : vector<1x6x320xf32> to vector<6x320xf32>
    %164 = vector.shape_cast %161 : vector<6x320xf32> to vector<1x6x320xf32>
    tpu.vector_store %arg3[%c30, %c0_157, %c0_158], %164 {strides = array<i32>} : memref<40x6x320xf32, #tpu.memory_space<vmem>>, vector<1x6x320xf32>,
    %c1_159 = arith.constant 1 : index
    %c0_160 = arith.constant 0 : index
    %c0_161 = arith.constant 0 : index
    %165 = vector.load %arg2[%c1_159, %c0_160, %c0_161] : memref<3x32x320xbf16, #tpu.memory_space<vmem>>, vector<1x32x320xbf16>
    %166 = vector.shape_cast %165 : vector<1x32x320xbf16> to vector<32x320xbf16>
    %cst_162 = arith.constant dense<0.000000e+00> : vector<6x320xf32>
    %167 = tpu.matmul %158, %166, %cst_162 {dimension_numbers = #tpu.dot_dimension_numbers<[1], [0], [0], [1], [0, 0, 1, 1], [], []>} : vector<6x32xbf16>, vector<32x320xbf16>, vector<6x320xf32> -> vector<6x320xf32>
    %c32 = arith.constant 32 : index
    %c0_163 = arith.constant 0 : index
    %c0_164 = arith.constant 0 : index
    %168 = vector.load %arg3[%c32, %c0_163, %c0_164] : memref<40x6x320xf32, #tpu.memory_space<vmem>>, vector<1x6x320xf32>
    %169 = vector.shape_cast %168 : vector<1x6x320xf32> to vector<6x320xf32>
    %170 = vector.shape_cast %167 : vector<6x320xf32> to vector<1x6x320xf32>
    tpu.vector_store %arg3[%c32, %c0_163, %c0_164], %170 {strides = array<i32>} : memref<40x6x320xf32, #tpu.memory_space<vmem>>, vector<1x6x320xf32>,
    %c2_165 = arith.constant 2 : index
    %c0_166 = arith.constant 0 : index
    %c0_167 = arith.constant 0 : index
    %171 = vector.load %arg2[%c2_165, %c0_166, %c0_167] : memref<3x32x320xbf16, #tpu.memory_space<vmem>>, vector<1x32x320xbf16>
    %172 = vector.shape_cast %171 : vector<1x32x320xbf16> to vector<32x320xbf16>
    %cst_168 = arith.constant dense<0.000000e+00> : vector<6x320xf32>
    %173 = tpu.matmul %158, %172, %cst_168 {dimension_numbers = #tpu.dot_dimension_numbers<[1], [0], [0], [1], [0, 0, 1, 1], [], []>} : vector<6x32xbf16>, vector<32x320xbf16>, vector<6x320xf32> -> vector<6x320xf32>
    %c34 = arith.constant 34 : index
    %c0_169 = arith.constant 0 : index
    %c0_170 = arith.constant 0 : index
    %174 = vector.load %arg3[%c34, %c0_169, %c0_170] : memref<40x6x320xf32, #tpu.memory_space<vmem>>, vector<1x6x320xf32>
    %175 = vector.shape_cast %174 : vector<1x6x320xf32> to vector<6x320xf32>
    %176 = vector.shape_cast %173 : vector<6x320xf32> to vector<1x6x320xf32>
    tpu.vector_store %arg3[%c34, %c0_169, %c0_170], %176 {strides = array<i32>} : memref<40x6x320xf32, #tpu.memory_space<vmem>>, vector<1x6x320xf32>,
    %c31 = arith.constant 31 : index
    %c0_171 = arith.constant 0 : index
    %c0_172 = arith.constant 0 : index
    %177 = vector.load %arg3[%c31, %c0_171, %c0_172] : memref<40x6x320xf32, #tpu.memory_space<vmem>>, vector<1x6x320xf32>
    %178 = vector.shape_cast %177 : vector<1x6x320xf32> to vector<6x320xf32>
    %179 = vector.shape_cast %0 : vector<6x320xf32> to vector<1x6x320xf32>
    tpu.vector_store %arg3[%c31, %c0_171, %c0_172], %179 {strides = array<i32>} : memref<40x6x320xf32, #tpu.memory_space<vmem>>, vector<1x6x320xf32>,
    %c33 = arith.constant 33 : index
    %c0_173 = arith.constant 0 : index
    %c0_174 = arith.constant 0 : index
    %180 = vector.load %arg3[%c33, %c0_173, %c0_174] : memref<40x6x320xf32, #tpu.memory_space<vmem>>, vector<1x6x320xf32>
    %181 = vector.shape_cast %180 : vector<1x6x320xf32> to vector<6x320xf32>
    %182 = vector.shape_cast %0 : vector<6x320xf32> to vector<1x6x320xf32>
    tpu.vector_store %arg3[%c33, %c0_173, %c0_174], %182 {strides = array<i32>} : memref<40x6x320xf32, #tpu.memory_space<vmem>>, vector<1x6x320xf32>,
    %c7_175 = arith.constant 7 : index
    %c0_176 = arith.constant 0 : index
    %c0_177 = arith.constant 0 : index
    %183 = vector.load %arg1[%c7_175, %c0_176, %c0_177] : memref<8x6x32xbf16, #tpu.memory_space<vmem>>, vector<1x6x32xbf16>
    %184 = vector.shape_cast %183 : vector<1x6x32xbf16> to vector<6x32xbf16>
    %c0_178 = arith.constant 0 : index
    %c0_179 = arith.constant 0 : index
    %c0_180 = arith.constant 0 : index
    %185 = vector.load %arg2[%c0_178, %c0_179, %c0_180] : memref<3x32x320xbf16, #tpu.memory_space<vmem>>, vector<1x32x320xbf16>
    %186 = vector.shape_cast %185 : vector<1x32x320xbf16> to vector<32x320xbf16>
    %cst_181 = arith.constant dense<0.000000e+00> : vector<6x320xf32>
    %187 = tpu.matmul %184, %186, %cst_181 {dimension_numbers = #tpu.dot_dimension_numbers<[1], [0], [0], [1], [0, 0, 1, 1], [], []>} : vector<6x32xbf16>, vector<32x320xbf16>, vector<6x320xf32> -> vector<6x320xf32>
    %c35 = arith.constant 35 : index
    %c0_182 = arith.constant 0 : index
    %c0_183 = arith.constant 0 : index
    %188 = vector.load %arg3[%c35, %c0_182, %c0_183] : memref<40x6x320xf32, #tpu.memory_space<vmem>>, vector<1x6x320xf32>
    %189 = vector.shape_cast %188 : vector<1x6x320xf32> to vector<6x320xf32>
    %190 = vector.shape_cast %187 : vector<6x320xf32> to vector<1x6x320xf32>
    tpu.vector_store %arg3[%c35, %c0_182, %c0_183], %190 {strides = array<i32>} : memref<40x6x320xf32, #tpu.memory_space<vmem>>, vector<1x6x320xf32>,
    %c1_184 = arith.constant 1 : index
    %c0_185 = arith.constant 0 : index
    %c0_186 = arith.constant 0 : index
    %191 = vector.load %arg2[%c1_184, %c0_185, %c0_186] : memref<3x32x320xbf16, #tpu.memory_space<vmem>>, vector<1x32x320xbf16>
    %192 = vector.shape_cast %191 : vector<1x32x320xbf16> to vector<32x320xbf16>
    %cst_187 = arith.constant dense<0.000000e+00> : vector<6x320xf32>
    %193 = tpu.matmul %184, %192, %cst_187 {dimension_numbers = #tpu.dot_dimension_numbers<[1], [0], [0], [1], [0, 0, 1, 1], [], []>} : vector<6x32xbf16>, vector<32x320xbf16>, vector<6x320xf32> -> vector<6x320xf32>
    %c37 = arith.constant 37 : index
    %c0_188 = arith.constant 0 : index
    %c0_189 = arith.constant 0 : index
    %194 = vector.load %arg3[%c37, %c0_188, %c0_189] : memref<40x6x320xf32, #tpu.memory_space<vmem>>, vector<1x6x320xf32>
    %195 = vector.shape_cast %194 : vector<1x6x320xf32> to vector<6x320xf32>
    %196 = vector.shape_cast %193 : vector<6x320xf32> to vector<1x6x320xf32>
    tpu.vector_store %arg3[%c37, %c0_188, %c0_189], %196 {strides = array<i32>} : memref<40x6x320xf32, #tpu.memory_space<vmem>>, vector<1x6x320xf32>,
    %c2_190 = arith.constant 2 : index
    %c0_191 = arith.constant 0 : index
    %c0_192 = arith.constant 0 : index
    %197 = vector.load %arg2[%c2_190, %c0_191, %c0_192] : memref<3x32x320xbf16, #tpu.memory_space<vmem>>, vector<1x32x320xbf16>
    %198 = vector.shape_cast %197 : vector<1x32x320xbf16> to vector<32x320xbf16>
    %cst_193 = arith.constant dense<0.000000e+00> : vector<6x320xf32>
    %199 = tpu.matmul %184, %198, %cst_193 {dimension_numbers = #tpu.dot_dimension_numbers<[1], [0], [0], [1], [0, 0, 1, 1], [], []>} : vector<6x32xbf16>, vector<32x320xbf16>, vector<6x320xf32> -> vector<6x320xf32>
    %c39 = arith.constant 39 : index
    %c0_194 = arith.constant 0 : index
    %c0_195 = arith.constant 0 : index
    %200 = vector.load %arg3[%c39, %c0_194, %c0_195] : memref<40x6x320xf32, #tpu.memory_space<vmem>>, vector<1x6x320xf32>
    %201 = vector.shape_cast %200 : vector<1x6x320xf32> to vector<6x320xf32>
    %202 = vector.shape_cast %199 : vector<6x320xf32> to vector<1x6x320xf32>
    tpu.vector_store %arg3[%c39, %c0_194, %c0_195], %202 {strides = array<i32>} : memref<40x6x320xf32, #tpu.memory_space<vmem>>, vector<1x6x320xf32>,
    %c36 = arith.constant 36 : index
    %c0_196 = arith.constant 0 : index
    %c0_197 = arith.constant 0 : index
    %203 = vector.load %arg3[%c36, %c0_196, %c0_197] : memref<40x6x320xf32, #tpu.memory_space<vmem>>, vector<1x6x320xf32>
    %204 = vector.shape_cast %203 : vector<1x6x320xf32> to vector<6x320xf32>
    %205 = vector.shape_cast %0 : vector<6x320xf32> to vector<1x6x320xf32>
    tpu.vector_store %arg3[%c36, %c0_196, %c0_197], %205 {strides = array<i32>} : memref<40x6x320xf32, #tpu.memory_space<vmem>>, vector<1x6x320xf32>,
    %c38 = arith.constant 38 : index
    %c0_198 = arith.constant 0 : index
    %c0_199 = arith.constant 0 : index
    %206 = vector.load %arg3[%c38, %c0_198, %c0_199] : memref<40x6x320xf32, #tpu.memory_space<vmem>>, vector<1x6x320xf32>
    %207 = vector.shape_cast %206 : vector<1x6x320xf32> to vector<6x320xf32>
    %208 = vector.shape_cast %0 : vector<6x320xf32> to vector<1x6x320xf32>
    tpu.vector_store %arg3[%c38, %c0_198, %c0_199], %208 {strides = array<i32>} : memref<40x6x320xf32, #tpu.memory_space<vmem>>, vector<1x6x320xf32>,
    return
  }
  func.func @transform_0(%arg0: i32) -> (i32, i32, i32) {
    %c0_i32 = arith.constant 0 : i32
    %c0_i32_0 = arith.constant 0 : i32
    %c0_i32_1 = arith.constant 0 : i32
    return %arg0, %c0_i32, %c0_i32_0 : i32, i32, i32
  }
  func.func @transform_1(%arg0: i32) -> (i32, i32, i32) {
    %c0_i32 = arith.constant 0 : i32
    %c0_i32_0 = arith.constant 0 : i32
    %c0_i32_1 = arith.constant 0 : i32
    %c0_i32_2 = arith.constant 0 : i32
    return %c0_i32, %c0_i32_0, %c0_i32_1 : i32, i32, i32
  }
  func.func @transform_2(%arg0: i32) -> (i32, i32, i32) {
    %c0_i32 = arith.constant 0 : i32
    %c0_i32_0 = arith.constant 0 : i32
    %c0_i32_1 = arith.constant 0 : i32
    return %arg0, %c0_i32, %c0_i32_0 : i32, i32, i32
  }
}

</mosaic_0001>

<bundles_post_ra>
// kernel: conv_transpose2d_pallas.1
= control target key start
LH: loop header
LB: loop body
LE: loop exit
PB: predicated region body
PF: predicated region fallthrough
CT: control target
= control target key end

     0   :  { %s4154_s9 = smov 0   ;;  %s4887_s0 = inlined_call_operand.vmem [shape: bf16[16,6,32], index: 0, kind: input, shape index: {}]   ;;  %s4888_s1 = inlined_call_operand.vmem [shape: bf16[3,32,320], index: 1, kind: input, shape index: {}]   ;;  %s4889_s2 = inlined_call_operand.vmem [shape: f32[80,6,320], index: 2, kind: output, shape index: {}]  }
   0x1 LB: > { %s3314_s10 = sadd.s32 4294967295, %s4134_s9   ;;  %p3318_p0 = scmp.ge.s32.totalorder %s4134_s9, 1  ;;  %s4134_s9 = sphi %s4154_s9, %s12_s9  }
   0x2   : > { %p113_p1 = scmp.lt.s32.totalorder %s4134_s9, 3 }
   0x4   : > { %p114_p2 = pnand %p3318_p0, %p113_p1 }
   0x5   : > { %v4165_v0 = vld [vmem:[%s4888_s1 + $0x4] ss:$12 sps:$4 sm:$0xff] (!%p114_p2)   ;;  %v4136_v1 = vmov (!%p114_p2), 0.0   ;;  %v4046_v2 = vld [vmem:[%s4888_s1 + $0x8] ss:$12 sps:$4 sm:$0xff] (!%p114_p2)   ;;  %vm4137_vm0 = vmmov (!%p114_p2), 0  }
   0x6   : > { %117 = sbr.rel (%p114_p2) target bundleno = 416 (0x1a0), region = 28  ;;  %3840 = vmatprep.subr.bf16.mxu1 (!%p114_p2), %v4136_v1  ;;  %3844 = vmatprep.mubr.msk.bf16.mxu1 (!%p114_p2), %vm4137_vm0, %v4136_v1  ;;  %v4177_v3 = vld [vmem:[%s4888_s1] ss:$12 sps:$4 sm:$0xff] (!%p114_p2)   ;;  %s3319_s17 = sshll.u32 (!%p114_p2), %s3314_s10, 3  ;;  %v4184_v4 = vld [vmem:[%s4888_s1 + $0x1c] ss:$12 sps:$4 sm:$0xff] (!%p114_p2)  }
   0x7   : > { %195 = vmatprep.subr.bf16.mxu0 (!%p114_p2), %v4165_v0  ;;  %3841 = vmatpush3.bf16.msra.mxu1 (!%p114_p2), %v4046_v2  ;;  %v4138_v5 = vmov (!%p114_p2), 0   ;;  %v4050_v6 = vld [vmem:[%s4888_s1 + $0x20] ss:$12 sps:$4 sm:$0xff] (!%p114_p2)   ;;  %v4195_v7 = vld [vmem:[%s4888_s1 + $0x18] ss:$12 sps:$4 sm:$0xff] (!%p114_p2)   ;;  %p137_p3 = scmp.lt.s32.totalorder (!%p114_p2), %s3319_s17, 15 }
   0x8   : > { %227 = vmatprep.mubr.bf16.mxu0 (!%p114_p2), %v4138_v5  ;;  %196 = vmatpush1.bf16.msra.mxu0 (!%p114_p2), %v4177_v3  ;;  %v4201_v8 = vld [vmem:[%s4888_s1 + $0x34] ss:$12 sps:$4 sm:$0xff] (!%p114_p2)   ;;  %vm191_vm1 = vcmask (!%p114_p2), 261120   ;;  %v4208_v9 = vld [vmem:[%s4888_s1 + $0x30] ss:$12 sps:$4 sm:$0xff] (!%p114_p2)   ;;  %s142_s23 = smul.u32 (!%p114_p2), 40, %s3314_s10 }
   0x9   : > { %3842 = vmatprep.subr.bf16.mxu1 (!%p114_p2), %v4136_v1  ;;  %197 = vmatprep.subr.bf16.mxu0 (!%p114_p2), %v4184_v4  ;;  %v4055_v10 = vld [vmem:[%s4888_s1 + $0x38] ss:$12 sps:$4 sm:$0xff] (!%p114_p2)   ;;  %v4230_v13 = vld [vmem:[%s4888_s1 + $0x48] ss:$12 sps:$4 sm:$0xff] (!%p114_p2)   ;;  %v4059_v14 = vld [vmem:[%s4888_s1 + $0x50] ss:$12 sps:$4 sm:$0xff] (!%p114_p2)  }
   0xa   : > { %v4222_v11 = vld [vmem:[%s4888_s1 + $0x4c] ss:$12 sps:$4 sm:$0xff] (!%p114_p2)   ;;  %v4241_v15 = vld [vmem:[%s4888_s1 + $0x64] ss:$12 sps:$4 sm:$0xff] (!%p114_p2)   ;;  %v4063_v17 = vld [vmem:[%s4888_s1 + $0x68] ss:$12 sps:$4 sm:$0xff] (!%p114_p2)  }
   0xb   : > { %3843 = vmatpush3.bf16.msra.mxu1 (!%p114_p2), %v4050_v6  ;;  %v4250_v16 = vld [vmem:[%s4888_s1 + $0x60] ss:$12 sps:$4 sm:$0xff] (!%p114_p2)   ;;  %v4260_v18 = vld [vmem:[%s4888_s1 + $0x7c] ss:$12 sps:$4 sm:$0xff] (!%p114_p2)   ;;  %v4267_v19 = vld [vmem:[%s4888_s1 + $0x78] ss:$12 sps:$4 sm:$0xff] (!%p114_p2)  }
   0xc   : > { %198 = vmatpush1.bf16.msra.mxu0 (!%p114_p2), %v4195_v7  ;;  %3848 = vmatprep.subr.bf16.mxu1 (!%p114_p2), %v4136_v1  ;;  %v4067_v20 = vld [vmem:[%s4888_s1 + $0x80] ss:$12 sps:$4 sm:$0xff] (!%p114_p2)   ;;  %v4068_v21 = vld [vmem:[%s4888_s1 + $0x8] ss:$12 sps:$4 sm:$0xff] (!%p114_p2)   ;;  %v4070_v24 = vld [vmem:[%s4888_s1 + $0x38] ss:$12 sps:$4 sm:$0xff] (!%p114_p2)  }
   0xd   : > { %s4891_s17 = smov (!%p137_p3, %s3319_s17), 15  ;;  %321 = vmatprep.subr.bf16.mxu0 %v4201_v8  ;;  %v4069_v22 = vld [vmem:[%s4888_s1 + $0x20] ss:$12 sps:$4 sm:$0xff]   ;;  %v4071_v25 = vld [vmem:[%s4888_s1 + $0x50] ss:$12 sps:$4 sm:$0xff]   ;;  %p143_p4 = scmp.lt.s32.totalorder %s142_s23, 79 }
   0xe   : > { %s3320_s26 = sshll.u32 %s4891_s17, 2  ;;  %v4072_v26 = vld [vmem:[%s4888_s1 + $0x68] ss:$12 sps:$4 sm:$0xff]   ;;  %v4073_v27 = vld [vmem:[%s4888_s1 + $0x80] ss:$12 sps:$4 sm:$0xff]   ;;  %vm278_vm2 = vcmask 521216  }
   0xf   : > { %s4216_s5 = scalar_lea.vmem %s4887_s0, %s3320_s26  ;;  %v4074_v28 = vld [vmem:[%s4888_s1 + $0x8] ss:$12 sps:$4 sm:$0xff]   ;;  %v4075_v29 = vld [vmem:[%s4888_s1 + $0x20] ss:$12 sps:$4 sm:$0xff]   ;;  %v4076_v31 = vld [vmem:[%s4888_s1 + $0x38] ss:$12 sps:$4 sm:$0xff]  }
  0x10   : > { %v150_v12 = vld [vmem:[%s4216_s5] sm:$0x7]  ;;  %v3374_v23 = vld [vmem:[%s4216_s5 + $0x4] sm:$0x7]  ;;  %v3430_v30 = vld [vmem:[%s4216_s5 + $0x8] sm:$0x7] }
  0x11   : > { %3845 = vmatmul.mubr.msk.bf16.vlgmr.msra.gmra.mrb[0].mxu1 %vm191_vm1, %v150_v12  ;;  %3328 = vmatmul.mubr.msk.bf16.vlgmr.msra.gmra.mrb[0].mxu0 %vm191_vm1, %v150_v12  ;;  %v4077_v32 = vld [vmem:[%s4888_s1 + $0x50] ss:$12 sps:$4 sm:$0xff]   ;;  %v4078_v33 = vld [vmem:[%s4888_s1 + $0x68] ss:$12 sps:$4 sm:$0xff]   ;;  %v4079_v34 = vld [vmem:[%s4888_s1 + $0x80] ss:$12 sps:$4 sm:$0xff]  }
  0x12   : > { %3849 = vmatpush3.bf16.msra.mxu1 %v4055_v10  ;;  %322 = vmatpush1.bf16.msra.mxu0 %v4208_v9  ;;  %s4893_s23 = smov (!%p143_p4, %s142_s23), 79  ;;  %v4080_v35 = vld [vmem:[%s4888_s1 + $0x8] ss:$12 sps:$4 sm:$0xff]   ;;  %v4081_v36 = vld [vmem:[%s4888_s1 + $0x20] ss:$12 sps:$4 sm:$0xff]  }
  0x13   : > { %3850 = vmatprep.subr.bf16.mxu1 %v4136_v1  ;;  %323 = vmatprep.subr.bf16.mxu0 %v4222_v11  ;;  %s4032_s27 = smul.u32 24, %s4893_s23  ;;  %v3486_v37 = vld [vmem:[%s4216_s5 + $0xc] sm:$0x7]  ;;  %v4082_v38 = vld [vmem:[%s4888_s1 + $0x38] ss:$12 sps:$4 sm:$0xff]  }
  0x14   : > { %3852 = vmatprep.mubr.msk.bf16.mxu1 %vm4137_vm0, %v4136_v1  ;;  %353 = vmatprep.mubr.bf16.mxu0 %v4138_v5  ;;  %v4083_v39 = vld [vmem:[%s4888_s1 + $0x50] ss:$12 sps:$4 sm:$0xff]   ;;  %v4084_v40 = vld [vmem:[%s4888_s1 + $0x68] ss:$12 sps:$4 sm:$0xff]   ;;  %v4085_v41 = vld [vmem:[%s4888_s1 + $0x80] ss:$12 sps:$4 sm:$0xff]  }
  0x15   : > { %s4395_s30 = scalar_lea.vmem %s4889_s2, %s4032_s27  ;;  %v4086_v42 = vld [vmem:[%s4888_s1 + $0x8] ss:$12 sps:$4 sm:$0xff]   ;;  %v4087_v43 = vld [vmem:[%s4888_s1 + $0x20] ss:$12 sps:$4 sm:$0xff]   ;;  %v3542_v44 = vld [vmem:[%s4216_s5 + $0x10] sm:$0x7] }
  0x16   : > { %3851 = vmatpush3.bf16.msra.mxu1 %v4059_v14  ;;  %324 = vmatpush1.bf16.msra.mxu0 %v4230_v13  ;;  %3368 = vst [vmem:[%s4395_s30 + $0x18] sm:$0x3f] %v4136_v1  ;;  %3369 = vst [vmem:[%s4395_s30 + $0x20] sm:$0x3f] %v4136_v1  ;;  %v4088_v45 = vld [vmem:[%s4888_s1 + $0x38] ss:$12 sps:$4 sm:$0xff]  }
  0x17   : > { %3856 = vmatprep.subr.bf16.mxu1 %v4136_v1  ;;  %447 = vmatprep.subr.bf16.mxu0 %v4241_v15  ;;  %3371 = vst [vmem:[%s4395_s30 + $0x48] sm:$0x3f] %v4136_v1  ;;  %3372 = vst [vmem:[%s4395_s30 + $0x50] sm:$0x3f] %v4136_v1  ;;  %v4089_v46 = vld [vmem:[%s4888_s1 + $0x50] ss:$12 sps:$4 sm:$0xff]  }
  0x18   : > { %3424 = vst [vmem:[%s4395_s30 + $0x90] sm:$0x3f] %v4136_v1  ;;  %3425 = vst [vmem:[%s4395_s30 + $0x98] sm:$0x3f] %v4136_v1  ;;  %v4090_v47 = vld [vmem:[%s4888_s1 + $0x68] ss:$12 sps:$4 sm:$0xff]  }
  0x19   : > { %3853 = vmatmul.mubr.msk.bf16.vlgmr.msra.gmra.mrb[4].mxu1 %vm191_vm1, %v150_v12  ;;  %3344 = vmatmul.mubr.msk.bf16.vlgmr.msra.gmra.mrb[4].mxu0 %vm191_vm1, %v150_v12  ;;  %3427 = vst [vmem:[%s4395_s30 + $0xc0] sm:$0x3f] %v4136_v1  ;;  %3428 = vst [vmem:[%s4395_s30 + $0xc8] sm:$0x3f] %v4136_v1  ;;  %v4091_v48 = vld [vmem:[%s4888_s1 + $0x80] ss:$12 sps:$4 sm:$0xff]  }
  0x1a   : > { %3857 = vmatpush3.bf16.msra.mxu1 %v4063_v17  ;;  %448 = vmatpush1.bf16.msra.mxu0 %v4250_v16  ;;  %3480 = vst [vmem:[%s4395_s30 + $0x108] sm:$0x3f] %v4136_v1  ;;  %3481 = vst [vmem:[%s4395_s30 + $0x110] sm:$0x3f] %v4136_v1  ;;  %v4092_v49 = vld [vmem:[%s4888_s1 + $0x8] ss:$12 sps:$4 sm:$0xff]  }
  0x1b   : > { %3858 = vmatprep.subr.bf16.mxu1 %v4136_v1  ;;  %449 = vmatprep.subr.bf16.mxu0 %v4260_v18  ;;  %3483 = vst [vmem:[%s4395_s30 + $0x138] sm:$0x3f] %v4136_v1  ;;  %3484 = vst [vmem:[%s4395_s30 + $0x140] sm:$0x3f] %v4136_v1  ;;  %v4093_v50 = vld [vmem:[%s4888_s1 + $0x20] ss:$12 sps:$4 sm:$0xff]  }
  0x1c   : > { %3860 = vmatprep.mubr.msk.bf16.mxu1 %vm4137_vm0, %v4136_v1  ;;  %479 = vmatprep.mubr.bf16.mxu0 %v4138_v5  ;;  %3536 = vst [vmem:[%s4395_s30 + $0x180] sm:$0x3f] %v4136_v1  ;;  %3537 = vst [vmem:[%s4395_s30 + $0x188] sm:$0x3f] %v4136_v1  ;;  %v3598_v51 = vld [vmem:[%s4216_s5 + $0x14] sm:$0x7] }
  0x1d   : > { %3539 = vst [vmem:[%s4395_s30 + $0x1b0] sm:$0x3f] %v4136_v1  ;;  %3540 = vst [vmem:[%s4395_s30 + $0x1b8] sm:$0x3f] %v4136_v1  ;;  %v4094_v52 = vld [vmem:[%s4888_s1 + $0x38] ss:$12 sps:$4 sm:$0xff]  }
  0x1e   : > { %3859 = vmatpush3.bf16.msra.mxu1 %v4067_v20  ;;  %450 = vmatpush1.bf16.msra.mxu0 %v4267_v19  ;;  %3592 = vst [vmem:[%s4395_s30 + $0x1f8] sm:$0x3f] %v4136_v1  ;;  %3593 = vst [vmem:[%s4395_s30 + $0x200] sm:$0x3f] %v4136_v1  ;;  %v4095_v53 = vld [vmem:[%s4888_s1 + $0x50] ss:$12 sps:$4 sm:$0xff]  }
  0x1f   : > { %3864 = vmatprep.subr.bf16.mxu1 %v4136_v1  ;;  %585 = vmatprep.subr.bf16.mxu0 %v4165_v0  ;;  %3595 = vst [vmem:[%s4395_s30 + $0x228] sm:$0x3f] %v4136_v1  ;;  %3596 = vst [vmem:[%s4395_s30 + $0x230] sm:$0x3f] %v4136_v1  ;;  %v4096_v54 = vld [vmem:[%s4888_s1 + $0x68] ss:$12 sps:$4 sm:$0xff]  }
  0x20   : > { %3648 = vst [vmem:[%s4395_s30 + $0x270] sm:$0x3f] %v4136_v1  ;;  %3649 = vst [vmem:[%s4395_s30 + $0x278] sm:$0x3f] %v4136_v1  ;;  %v4097_v55 = vld [vmem:[%s4888_s1 + $0x80] ss:$12 sps:$4 sm:$0xff]  }
  0x21   : > { %3861 = vmatmul.mubr.msk.bf16.vlgmr.msra.gmra.mrb[8].mxu1 %vm191_vm1, %v150_v12  ;;  %3363 = vmatmul.mubr.msk.bf16.vlgmr.msra.gmra.mrb[8].mxu0 %vm191_vm1, %v150_v12  ;;  %3651 = vst [vmem:[%s4395_s30 + $0x2a0] sm:$0x3f] %v4136_v1  ;;  %3652 = vst [vmem:[%s4395_s30 + $0x2a8] sm:$0x3f] %v4136_v1  ;;  %v4098_v56 = vld [vmem:[%s4888_s1 + $0x8] ss:$12 sps:$4 sm:$0xff]  }
  0x22   : > { %3865 = vmatpush3.bf16.msra.mxu1 %v4068_v21  ;;  %586 = vmatpush1.bf16.msra.mxu0 %v4177_v3  ;;  %3704 = vst [vmem:[%s4395_s30 + $0x2e8] sm:$0x3f] %v4136_v1  ;;  %3705 = vst [vmem:[%s4395_s30 + $0x2f0] sm:$0x3f] %v4136_v1  ;;  %v4099_v57 = vld [vmem:[%s4888_s1 + $0x20] ss:$12 sps:$4 sm:$0xff]  }
  0x23   : > { %3866 = vmatprep.subr.bf16.mxu1 %v4136_v1  ;;  %587 = vmatprep.subr.bf16.mxu0 %v4184_v4  ;;  %3707 = vst [vmem:[%s4395_s30 + $0x318] sm:$0x3f] %v4136_v1  ;;  %3708 = vst [vmem:[%s4395_s30 + $0x320] sm:$0x3f] %v4136_v1  ;;  %v3654_v58 = vld [vmem:[%s4216_s5 + $0x18] sm:$0x7] }
  0x24   : > { %3868 = vmatprep.mubr.msk.bf16.mxu1 %vm4137_vm0, %v4136_v1  ;;  %617 = vmatprep.mubr.bf16.mxu0 %v4138_v5  ;;  %3760 = vst [vmem:[%s4395_s30 + $0x360] sm:$0x3f] %v4136_v1  ;;  %3761 = vst [vmem:[%s4395_s30 + $0x368] sm:$0x3f] %v4136_v1  ;;  %v4100_v59 = vld [vmem:[%s4888_s1 + $0x38] ss:$12 sps:$4 sm:$0xff]  }
  0x25   : > { %3763 = vst [vmem:[%s4395_s30 + $0x390] sm:$0x3f] %v4136_v1  ;;  %3764 = vst [vmem:[%s4395_s30 + $0x398] sm:$0x3f] %v4136_v1  ;;  %v4101_v60 = vld [vmem:[%s4888_s1 + $0x50] ss:$12 sps:$4 sm:$0xff]  }
  0x26   : > { %3867 = vmatpush3.bf16.msra.mxu1 %v4069_v22  ;;  %588 = vmatpush1.bf16.msra.mxu0 %v4195_v7  ;;  %3370 = vst.msk [vmem:[%s4395_s30 + $0x28] sm:$0x3f] %vm278_vm2, %v4136_v1  ;;  %3373 = vst.msk [vmem:[%s4395_s30 + $0x58] sm:$0x3f] %vm278_vm2, %v4136_v1  ;;  %v4102_v61 = vld [vmem:[%s4888_s1 + $0x68] ss:$12 sps:$4 sm:$0xff]  }
  0x27   : > { %3872 = vmatprep.subr.bf16.mxu1 %v4136_v1  ;;  %710 = vmatprep.subr.bf16.mxu0 %v4201_v8  ;;  %3426 = vst.msk [vmem:[%s4395_s30 + $0xa0] sm:$0x3f] %vm278_vm2, %v4136_v1  ;;  %3429 = vst.msk [vmem:[%s4395_s30 + $0xd0] sm:$0x3f] %vm278_vm2, %v4136_v1  ;;  %v4103_v62 = vld [vmem:[%s4888_s1 + $0x80] ss:$12 sps:$4 sm:$0xff]  }
  0x28   : > { %3482 = vst.msk [vmem:[%s4395_s30 + $0x118] sm:$0x3f] %vm278_vm2, %v4136_v1  ;;  %3485 = vst.msk [vmem:[%s4395_s30 + $0x148] sm:$0x3f] %vm278_vm2, %v4136_v1  ;;  %v4106_v63 = vld [vmem:[%s4888_s1 + $0x4] ss:$12 sps:$4 sm:$0xff]  }
  0x29   : > { %3869 = vmatmul.mubr.msk.bf16.vlgmr.msra.gmra.mrb[12].mxu1 %vm191_vm1, %v3374_v23  ;;  %3381 = vmatmul.mubr.msk.bf16.vlgmr.msra.gmra.mrb[12].mxu0 %vm191_vm1, %v3374_v23  ;;  %3538 = vst.msk [vmem:[%s4395_s30 + $0x190] sm:$0x3f] %vm278_vm2, %v4136_v1  ;;  %3541 = vst.msk [vmem:[%s4395_s30 + $0x1c0] sm:$0x3f] %vm278_vm2, %v4136_v1  ;;  %v4107_v2 = vld [vmem:[%s4888_s1 + $0x8] ss:$12 sps:$4 sm:$0xff]  }
  0x2a   : > { %3873 = vmatpush3.bf16.msra.mxu1 %v4070_v24  ;;  %711 = vmatpush1.bf16.msra.mxu0 %v4208_v9  ;;  %3594 = vst.msk [vmem:[%s4395_s30 + $0x208] sm:$0x3f] %vm278_vm2, %v4136_v1  ;;  %3597 = vst.msk [vmem:[%s4395_s30 + $0x238] sm:$0x3f] %vm278_vm2, %v4136_v1  ;;  %v4111_v6 = vld [vmem:[%s4888_s1 + $0x20] ss:$12 sps:$4 sm:$0xff]  }
  0x2b   : > { %3874 = vmatprep.subr.bf16.mxu1 %v4136_v1  ;;  %712 = vmatprep.subr.bf16.mxu0 %v4222_v11  ;;  %3650 = vst.msk [vmem:[%s4395_s30 + $0x280] sm:$0x3f] %vm278_vm2, %v4136_v1  ;;  %3653 = vst.msk [vmem:[%s4395_s30 + $0x2b0] sm:$0x3f] %vm278_vm2, %v4136_v1  ;;  %v4115_v10 = vld [vmem:[%s4888_s1 + $0x38] ss:$12 sps:$4 sm:$0xff]  }
  0x2c   : > { %3876 = vmatprep.mubr.msk.bf16.mxu1 %vm4137_vm0, %v4136_v1  ;;  %742 = vmatprep.mubr.bf16.mxu0 %v4138_v5  ;;  %3706 = vst.msk [vmem:[%s4395_s30 + $0x2f8] sm:$0x3f] %vm278_vm2, %v4136_v1  ;;  %3709 = vst.msk [vmem:[%s4395_s30 + $0x328] sm:$0x3f] %vm278_vm2, %v4136_v1  ;;  %v4116_v12 = vld [vmem:[%s4888_s1 + $0x48] ss:$12 sps:$4 sm:$0xff]  }
  0x2d   : > { %3762 = vst.msk [vmem:[%s4395_s30 + $0x370] sm:$0x3f] %vm278_vm2, %v4136_v1  ;;  %3765 = vst.msk [vmem:[%s4395_s30 + $0x3a0] sm:$0x3f] %vm278_vm2, %v4136_v1  ;;  %v4122_v14 = vld [vmem:[%s4888_s1 + $0x64] ss:$12 sps:$4 sm:$0xff]  }
  0x2e   : > { %3875 = vmatpush3.bf16.msra.mxu1 %v4071_v25  ;;  %713 = vmatpush1.bf16.msra.mxu0 %v4230_v13  ;;  %v4126_v17 = vld [vmem:[%s4888_s1 + $0x7c] ss:$12 sps:$4 sm:$0xff]  }
  0x2f   : > { %3880 = vmatprep.subr.bf16.mxu1 %v4136_v1  ;;  %835 = vmatprep.subr.bf16.mxu0 %v4241_v15 }
  0x31   : > { %3877 = vmatmul.mubr.msk.bf16.vlgmr.msra.gmra.mrb[16].mxu1 %vm191_vm1, %v3374_v23  ;;  %3400 = vmatmul.mubr.msk.bf16.vlgmr.msra.gmra.mrb[16].mxu0 %vm191_vm1, %v3374_v23 }
  0x32   : > { %3881 = vmatpush3.bf16.msra.mxu1 %v4072_v26  ;;  %836 = vmatpush1.bf16.msra.mxu0 %v4250_v16 }
  0x33   : > { %3882 = vmatprep.subr.bf16.mxu1 %v4136_v1  ;;  %837 = vmatprep.subr.bf16.mxu0 %v4260_v18 }
  0x34   : > { %3884 = vmatprep.mubr.msk.bf16.mxu1 %vm4137_vm0, %v4136_v1  ;;  %867 = vmatprep.mubr.bf16.mxu0 %v4138_v5 }
  0x36   : > { %3883 = vmatpush3.bf16.msra.mxu1 %v4073_v27  ;;  %838 = vmatpush1.bf16.msra.mxu0 %v4267_v19 }
  0x37   : > { %3888 = vmatprep.subr.bf16.mxu1 %v4136_v1  ;;  %973 = vmatprep.subr.bf16.mxu0 %v4165_v0 }
  0x39   : > { %3885 = vmatmul.mubr.msk.bf16.vlgmr.msra.gmra.mrb[20].mxu1 %vm191_vm1, %v3374_v23  ;;  %3419 = vmatmul.mubr.msk.bf16.vlgmr.msra.gmra.mrb[20].mxu0 %vm191_vm1, %v3374_v23 }
  0x3a   : > { %3889 = vmatpush3.bf16.msra.mxu1 %v4074_v28  ;;  %974 = vmatpush1.bf16.msra.mxu0 %v4177_v3 }
  0x3b   : > { %3890 = vmatprep.subr.bf16.mxu1 %v4136_v1  ;;  %975 = vmatprep.subr.bf16.mxu0 %v4184_v4 }
  0x3c   : > { %3892 = vmatprep.mubr.msk.bf16.mxu1 %vm4137_vm0, %v4136_v1  ;;  %1005 = vmatprep.mubr.bf16.mxu0 %v4138_v5 }
  0x3e   : > { %3891 = vmatpush3.bf16.msra.mxu1 %v4075_v29  ;;  %976 = vmatpush1.bf16.msra.mxu0 %v4195_v7 }
  0x3f   : > { %3896 = vmatprep.subr.bf16.mxu1 %v4136_v1  ;;  %1098 = vmatprep.subr.bf16.mxu0 %v4201_v8 }
  0x41   : > { %3893 = vmatmul.mubr.msk.bf16.vlgmr.msra.gmra.mrb[24].mxu1 %vm191_vm1, %v3430_v30  ;;  %3437 = vmatmul.mubr.msk.bf16.vlgmr.msra.gmra.mrb[24].mxu0 %vm191_vm1, %v3430_v30 }
  0x42   : > { %3897 = vmatpush3.bf16.msra.mxu1 %v4076_v31  ;;  %1099 = vmatpush1.bf16.msra.mxu0 %v4208_v9 }
  0x43   : > { %3898 = vmatprep.subr.bf16.mxu1 %v4136_v1  ;;  %1100 = vmatprep.subr.bf16.mxu0 %v4222_v11 }
  0x44   : > { %3900 = vmatprep.mubr.msk.bf16.mxu1 %vm4137_vm0, %v4136_v1  ;;  %1130 = vmatprep.mubr.bf16.mxu0 %v4138_v5 }
  0x46   : > { %3899 = vmatpush3.bf16.msra.mxu1 %v4077_v32  ;;  %1101 = vmatpush1.bf16.msra.mxu0 %v4230_v13 }
  0x47   : > { %3904 = vmatprep.subr.bf16.mxu1 %v4136_v1  ;;  %1223 = vmatprep.subr.bf16.mxu0 %v4241_v15 }
  0x49   : > { %3901 = vmatmul.mubr.msk.bf16.vlgmr.msra.gmra.mrb[28].mxu1 %vm191_vm1, %v3430_v30  ;;  %3456 = vmatmul.mubr.msk.bf16.vlgmr.msra.gmra.mrb[28].mxu0 %vm191_vm1, %v3430_v30 }
  0x4a   : > { %3905 = vmatpush3.bf16.msra.mxu1 %v4078_v33  ;;  %1224 = vmatpush1.bf16.msra.mxu0 %v4250_v16 }
  0x4b   : > { %3906 = vmatprep.subr.bf16.mxu1 %v4136_v1  ;;  %1225 = vmatprep.subr.bf16.mxu0 %v4260_v18 }
  0x4c   : > { %3908 = vmatprep.mubr.msk.bf16.mxu1 %vm4137_vm0, %v4136_v1  ;;  %1255 = vmatprep.mubr.bf16.mxu0 %v4138_v5 }
  0x4e   : > { %3907 = vmatpush3.bf16.msra.mxu1 %v4079_v34  ;;  %1226 = vmatpush1.bf16.msra.mxu0 %v4267_v19 }
  0x4f   : > { %3912 = vmatprep.subr.bf16.mxu1 %v4136_v1  ;;  %1361 = vmatprep.subr.bf16.mxu0 %v4165_v0 }
  0x51   : > { %3909 = vmatmul.mubr.msk.bf16.vlgmr.msra.gmra.mrb[32].mxu1 %vm191_vm1, %v3430_v30  ;;  %3475 = vmatmul.mubr.msk.bf16.vlgmr.msra.gmra.mrb[32].mxu0 %vm191_vm1, %v3430_v30 }
  0x52   : > { %3913 = vmatpush3.bf16.msra.mxu1 %v4080_v35  ;;  %1362 = vmatpush1.bf16.msra.mxu0 %v4177_v3 }
  0x53   : > { %3914 = vmatprep.subr.bf16.mxu1 %v4136_v1  ;;  %1363 = vmatprep.subr.bf16.mxu0 %v4184_v4 }
  0x54   : > { %3916 = vmatprep.mubr.msk.bf16.mxu1 %vm4137_vm0, %v4136_v1  ;;  %1393 = vmatprep.mubr.bf16.mxu0 %v4138_v5 }
  0x56   : > { %3915 = vmatpush3.bf16.msra.mxu1 %v4081_v36  ;;  %1364 = vmatpush1.bf16.msra.mxu0 %v4195_v7 }
  0x57   : > { %3920 = vmatprep.subr.bf16.mxu1 %v4136_v1  ;;  %1486 = vmatprep.subr.bf16.mxu0 %v4201_v8 }
  0x59   : > { %3917 = vmatmul.mubr.msk.bf16.vlgmr.msra.gmra.mrb[36].mxu1 %vm191_vm1, %v3486_v37  ;;  %3493 = vmatmul.mubr.msk.bf16.vlgmr.msra.gmra.mrb[36].mxu0 %vm191_vm1, %v3486_v37 }
  0x5a   : > { %3921 = vmatpush3.bf16.msra.mxu1 %v4082_v38  ;;  %1487 = vmatpush1.bf16.msra.mxu0 %v4208_v9 }
  0x5b   : > { %3922 = vmatprep.subr.bf16.mxu1 %v4136_v1  ;;  %1488 = vmatprep.subr.bf16.mxu0 %v4222_v11 }
  0x5c   : > { %3924 = vmatprep.mubr.msk.bf16.mxu1 %vm4137_vm0, %v4136_v1  ;;  %1518 = vmatprep.mubr.bf16.mxu0 %v4138_v5 }
  0x5e   : > { %3923 = vmatpush3.bf16.msra.mxu1 %v4083_v39  ;;  %1489 = vmatpush1.bf16.msra.mxu0 %v4230_v13 }
  0x5f   : > { %3928 = vmatprep.subr.bf16.mxu1 %v4136_v1  ;;  %1611 = vmatprep.subr.bf16.mxu0 %v4241_v15 }
  0x61   : > { %3925 = vmatmul.mubr.msk.bf16.vlgmr.msra.gmra.mrb[40].mxu1 %vm191_vm1, %v3486_v37  ;;  %3512 = vmatmul.mubr.msk.bf16.vlgmr.msra.gmra.mrb[40].mxu0 %vm191_vm1, %v3486_v37 }
  0x62   : > { %3929 = vmatpush3.bf16.msra.mxu1 %v4084_v40  ;;  %1612 = vmatpush1.bf16.msra.mxu0 %v4250_v16 }
  0x63   : > { %3930 = vmatprep.subr.bf16.mxu1 %v4136_v1  ;;  %1613 = vmatprep.subr.bf16.mxu0 %v4260_v18 }
  0x64   : > { %3932 = vmatprep.mubr.msk.bf16.mxu1 %vm4137_vm0, %v4136_v1  ;;  %1643 = vmatprep.mubr.bf16.mxu0 %v4138_v5 }
  0x66   : > { %3931 = vmatpush3.bf16.msra.mxu1 %v4085_v41  ;;  %1614 = vmatpush1.bf16.msra.mxu0 %v4267_v19 }
  0x67   : > { %3936 = vmatprep.subr.bf16.mxu1 %v4136_v1  ;;  %1749 = vmatprep.subr.bf16.mxu0 %v4165_v0 }
  0x69   : > { %3933 = vmatmul.mubr.msk.bf16.vlgmr.msra.gmra.mrb[44].mxu1 %vm191_vm1, %v3486_v37  ;;  %3531 = vmatmul.mubr.msk.bf16.vlgmr.msra.gmra.mrb[44].mxu0 %vm191_vm1, %v3486_v37 }
  0x6a   : > { %3937 = vmatpush3.bf16.msra.mxu1 %v4086_v42  ;;  %1750 = vmatpush1.bf16.msra.mxu0 %v4177_v3 }
  0x6b   : > { %3938 = vmatprep.subr.bf16.mxu1 %v4136_v1  ;;  %1751 = vmatprep.subr.bf16.mxu0 %v4184_v4 }
  0x6c   : > { %3940 = vmatprep.mubr.msk.bf16.mxu1 %vm4137_vm0, %v4136_v1  ;;  %1781 = vmatprep.mubr.bf16.mxu0 %v4138_v5 }
  0x6e   : > { %3939 = vmatpush3.bf16.msra.mxu1 %v4087_v43  ;;  %1752 = vmatpush1.bf16.msra.mxu0 %v4195_v7 }
  0x6f   : > { %3944 = vmatprep.subr.bf16.mxu1 %v4136_v1  ;;  %1874 = vmatprep.subr.bf16.mxu0 %v4201_v8 }
  0x71   : > { %3941 = vmatmul.mubr.msk.bf16.vlgmr.msra.gmra.mrb[48].mxu1 %vm191_vm1, %v3542_v44  ;;  %3549 = vmatmul.mubr.msk.bf16.vlgmr.msra.gmra.mrb[48].mxu0 %vm191_vm1, %v3542_v44 }
  0x72   : > { %3945 = vmatpush3.bf16.msra.mxu1 %v4088_v45  ;;  %1875 = vmatpush1.bf16.msra.mxu0 %v4208_v9 }
  0x73   : > { %3946 = vmatprep.subr.bf16.mxu1 %v4136_v1  ;;  %1876 = vmatprep.subr.bf16.mxu0 %v4222_v11 }
  0x74   : > { %3948 = vmatprep.mubr.msk.bf16.mxu1 %vm4137_vm0, %v4136_v1  ;;  %1906 = vmatprep.mubr.bf16.mxu0 %v4138_v5 }
  0x76   : > { %3947 = vmatpush3.bf16.msra.mxu1 %v4089_v46  ;;  %1877 = vmatpush1.bf16.msra.mxu0 %v4230_v13 }
  0x77   : > { %3952 = vmatprep.subr.bf16.mxu1 %v4136_v1  ;;  %1999 = vmatprep.subr.bf16.mxu0 %v4241_v15 }
  0x79   : > { %3949 = vmatmul.mubr.msk.bf16.vlgmr.msra.gmra.mrb[52].mxu1 %vm191_vm1, %v3542_v44  ;;  %3568 = vmatmul.mubr.msk.bf16.vlgmr.msra.gmra.mrb[52].mxu0 %vm191_vm1, %v3542_v44 }
  0x7a   : > { %3953 = vmatpush3.bf16.msra.mxu1 %v4090_v47  ;;  %2000 = vmatpush1.bf16.msra.mxu0 %v4250_v16 }
  0x7b   : > { %3954 = vmatprep.subr.bf16.mxu1 %v4136_v1  ;;  %2001 = vmatprep.subr.bf16.mxu0 %v4260_v18 }
  0x7c   : > { %3956 = vmatprep.mubr.msk.bf16.mxu1 %vm4137_vm0, %v4136_v1  ;;  %2031 = vmatprep.mubr.bf16.mxu0 %v4138_v5 }
  0x7e   : > { %3955 = vmatpush3.bf16.msra.mxu1 %v4091_v48  ;;  %2002 = vmatpush1.bf16.msra.mxu0 %v4267_v19 }
  0x7f   : > { %3960 = vmatprep.subr.bf16.mxu1 %v4136_v1  ;;  %2137 = vmatprep.subr.bf16.mxu0 %v4165_v0 }
  0x81   : > { %3957 = vmatmul.mubr.msk.bf16.vlgmr.msra.gmra.mrb[56].mxu1 %vm191_vm1, %v3542_v44  ;;  %3587 = vmatmul.mubr.msk.bf16.vlgmr.msra.gmra.mrb[56].mxu0 %vm191_vm1, %v3542_v44 }
  0x82   : > { %3961 = vmatpush3.bf16.msra.mxu1 %v4092_v49  ;;  %2138 = vmatpush1.bf16.msra.mxu0 %v4177_v3 }
  0x83   : > { %3962 = vmatprep.subr.bf16.mxu1 %v4136_v1  ;;  %2139 = vmatprep.subr.bf16.mxu0 %v4184_v4 }
  0x84   : > { %3964 = vmatprep.mubr.msk.bf16.mxu1 %vm4137_vm0, %v4136_v1  ;;  %2169 = vmatprep.mubr.bf16.mxu0 %v4138_v5 }
  0x86   : > { %3963 = vmatpush3.bf16.msra.mxu1 %v4093_v50  ;;  %2140 = vmatpush1.bf16.msra.mxu0 %v4195_v7 }
  0x87   : > { %3968 = vmatprep.subr.bf16.mxu1 %v4136_v1  ;;  %2262 = vmatprep.subr.bf16.mxu0 %v4201_v8 }
  0x89   : > { %3965 = vmatmul.mubr.msk.bf16.vlgmr.msra.gmra.mrb[60].mxu1 %vm191_vm1, %v3598_v51  ;;  %3605 = vmatmul.mubr.msk.bf16.vlgmr.msra.gmra.mrb[60].mxu0 %vm191_vm1, %v3598_v51 }
  0x8a   : > { %3969 = vmatpush3.bf16.msra.mxu1 %v4094_v52  ;;  %2263 = vmatpush1.bf16.msra.mxu0 %v4208_v9 }
  0x8b   : > { %3970 = vmatprep.subr.bf16.mxu1 %v4136_v1  ;;  %2264 = vmatprep.subr.bf16.mxu0 %v4222_v11 }
  0x8c   : > { %3972 = vmatprep.mubr.msk.bf16.mxu1 %vm4137_vm0, %v4136_v1  ;;  %2294 = vmatprep.mubr.bf16.mxu0 %v4138_v5 }
  0x8e   : > { %3971 = vmatpush3.bf16.msra.mxu1 %v4095_v53  ;;  %2265 = vmatpush1.bf16.msra.mxu0 %v4230_v13 }
  0x8f   : > { %3976 = vmatprep.subr.bf16.mxu1 %v4136_v1  ;;  %2387 = vmatprep.subr.bf16.mxu0 %v4241_v15 }
  0x91   : > { %3973 = vmatmul.mubr.msk.bf16.vlgmr.msra.gmra.mrb[64].mxu1 %vm191_vm1, %v3598_v51  ;;  %3624 = vmatmul.mubr.msk.bf16.vlgmr.msra.gmra.mrb[64].mxu0 %vm191_vm1, %v3598_v51 }
  0x92   : > { %3977 = vmatpush3.bf16.msra.mxu1 %v4096_v54  ;;  %2388 = vmatpush1.bf16.msra.mxu0 %v4250_v16 }
  0x93   : > { %3978 = vmatprep.subr.bf16.mxu1 %v4136_v1  ;;  %2389 = vmatprep.subr.bf16.mxu0 %v4260_v18 }
  0x94   : > { %3980 = vmatprep.mubr.msk.bf16.mxu1 %vm4137_vm0, %v4136_v1  ;;  %2419 = vmatprep.mubr.bf16.mxu0 %v4138_v5 }
  0x96   : > { %3979 = vmatpush3.bf16.msra.mxu1 %v4097_v55  ;;  %2390 = vmatpush1.bf16.msra.mxu0 %v4267_v19 }
  0x97   : > { %3984 = vmatprep.subr.bf16.mxu1 %v4136_v1  ;;  %2525 = vmatprep.subr.bf16.mxu0 %v4165_v0  ;;  %v4104_v0 = vld [vmem:[%s4888_s1] ss:$12 sps:$4 sm:$0xff]  }
  0x99   : > { %3981 = vmatmul.mubr.msk.bf16.vlgmr.msra.gmra.mrb[68].mxu1 %vm191_vm1, %v3598_v51  ;;  %3643 = vmatmul.mubr.msk.bf16.vlgmr.msra.gmra.mrb[68].mxu0 %vm191_vm1, %v3598_v51 }
  0x9a   : > { %3985 = vmatpush3.bf16.msra.mxu1 %v4098_v56  ;;  %2526 = vmatpush1.bf16.msra.mxu0 %v4177_v3  ;;  %v4110_v3 = vld [vmem:[%s4888_s1 + $0x1c] ss:$12 sps:$4 sm:$0xff]  }
  0x9b   : > { %3986 = vmatprep.subr.bf16.mxu1 %v4136_v1  ;;  %2527 = vmatprep.subr.bf16.mxu0 %v4184_v4  ;;  %v4108_v4 = vld [vmem:[%s4888_s1 + $0x18] ss:$12 sps:$4 sm:$0xff]  }
  0x9c   : > { %3988 = vmatprep.mubr.msk.bf16.mxu1 %vm4137_vm0, %v4136_v1  ;;  %2557 = vmatprep.mubr.bf16.mxu0 %v4138_v5 }
  0x9e   : > { %3987 = vmatpush3.bf16.msra.mxu1 %v4099_v57  ;;  %2528 = vmatpush1.bf16.msra.mxu0 %v4195_v7  ;;  %v4114_v7 = vld [vmem:[%s4888_s1 + $0x34] ss:$12 sps:$4 sm:$0xff]  }
  0x9f   : > { %3992 = vmatprep.subr.bf16.mxu1 %v4136_v1  ;;  %2650 = vmatprep.subr.bf16.mxu0 %v4201_v8  ;;  %v3710_v8 = vld [vmem:[%s4216_s5 + $0x1c] sm:$0x7] }
  0xa1   : > { %3989 = vmatmul.mubr.msk.bf16.vlgmr.msra.gmra.mrb[72].mxu1 %vm191_vm1, %v3654_v58  ;;  %3661 = vmatmul.mubr.msk.bf16.vlgmr.msra.gmra.mrb[72].mxu0 %vm191_vm1, %v3654_v58 }
  0xa2   : > { %3993 = vmatpush3.bf16.msra.mxu1 %v4100_v59  ;;  %2651 = vmatpush1.bf16.msra.mxu0 %v4208_v9  ;;  %v4112_v9 = vld [vmem:[%s4888_s1 + $0x30] ss:$12 sps:$4 sm:$0xff]  }
  0xa3   : > { %3994 = vmatprep.subr.bf16.mxu1 %v4136_v1  ;;  %2652 = vmatprep.subr.bf16.mxu0 %v4222_v11  ;;  %v4118_v11 = vld [vmem:[%s4888_s1 + $0x4c] ss:$12 sps:$4 sm:$0xff]  }
  0xa4   : > { %3996 = vmatprep.mubr.msk.bf16.mxu1 %vm4137_vm0, %v4136_v1  ;;  %2682 = vmatprep.mubr.bf16.mxu0 %v4138_v5 }
  0xa6   : > { %3995 = vmatpush3.bf16.msra.mxu1 %v4101_v60  ;;  %2653 = vmatpush1.bf16.msra.mxu0 %v4230_v13  ;;  %v4119_v13 = vld [vmem:[%s4888_s1 + $0x50] ss:$12 sps:$4 sm:$0xff]  }
  0xa7   : > { %4000 = vmatprep.subr.bf16.mxu1 %v4136_v1  ;;  %2775 = vmatprep.subr.bf16.mxu0 %v4241_v15  ;;  %v4120_v15 = vld [vmem:[%s4888_s1 + $0x60] ss:$12 sps:$4 sm:$0xff]  }
  0xa9   : > { %3997 = vmatmul.mubr.msk.bf16.vlgmr.msra.gmra.mrb[76].mxu1 %vm191_vm1, %v3654_v58  ;;  %3680 = vmatmul.mubr.msk.bf16.vlgmr.msra.gmra.mrb[76].mxu0 %vm191_vm1, %v3654_v58 }
  0xaa   : > { %4001 = vmatpush3.bf16.msra.mxu1 %v4102_v61  ;;  %2776 = vmatpush1.bf16.msra.mxu0 %v4250_v16  ;;  %v4123_v16 = vld [vmem:[%s4888_s1 + $0x68] ss:$12 sps:$4 sm:$0xff]  }
  0xab   : > { %4002 = vmatprep.subr.bf16.mxu1 %v4136_v1  ;;  %2777 = vmatprep.subr.bf16.mxu0 %v4260_v18  ;;  %v4124_v18 = vld [vmem:[%s4888_s1 + $0x78] ss:$12 sps:$4 sm:$0xff]  }
  0xac   : > { %4004 = vmatprep.mubr.msk.bf16.mxu1 %vm4137_vm0, %v4136_v1  ;;  %2807 = vmatprep.mubr.bf16.mxu0 %v4138_v5 }
  0xae   : > { %4003 = vmatpush3.bf16.msra.mxu1 %v4103_v62  ;;  %2778 = vmatpush1.bf16.msra.mxu0 %v4267_v19  ;;  %v4127_v19 = vld [vmem:[%s4888_s1 + $0x80] ss:$12 sps:$4 sm:$0xff]  }
  0xaf   : > { %4008 = vmatprep.subr.bf16.mxu1 %v4136_v1  ;;  %2913 = vmatprep.subr.bf16.mxu0 %v4106_v63 }
  0xb1   : > { %4005 = vmatmul.mubr.msk.bf16.vlgmr.msra.gmra.mrb[80].mxu1 %vm191_vm1, %v3654_v58  ;;  %3699 = vmatmul.mubr.msk.bf16.vlgmr.msra.gmra.mrb[80].mxu0 %vm191_vm1, %v3654_v58 }
  0xb2   : > { %4009 = vmatpush3.bf16.msra.mxu1 %v4107_v2  ;;  %2914 = vmatpush1.bf16.msra.mxu0 %v4104_v0 }
  0xb3   : > { %4010 = vmatprep.subr.bf16.mxu1 %v4136_v1  ;;  %2915 = vmatprep.subr.bf16.mxu0 %v4110_v3 }
  0xb4   : > { %4012 = vmatprep.mubr.msk.bf16.mxu1 %vm4137_vm0, %v4136_v1  ;;  %2945 = vmatprep.mubr.bf16.mxu0 %v4138_v5 }
  0xb6   : > { %4011 = vmatpush3.bf16.msra.mxu1 %v4111_v6  ;;  %2916 = vmatpush1.bf16.msra.mxu0 %v4108_v4 }
  0xb7   : > { %4016 = vmatprep.subr.bf16.mxu1 %v4136_v1  ;;  %3038 = vmatprep.subr.bf16.mxu0 %v4114_v7 }
  0xb9   : > { %4013 = vmatmul.mubr.msk.bf16.vlgmr.msra.gmra.mrb[84].mxu1 %vm191_vm1, %v3710_v8  ;;  %3717 = vmatmul.mubr.msk.bf16.vlgmr.msra.gmra.mrb[84].mxu0 %vm191_vm1, %v3710_v8 }
  0xba   : > { %4017 = vmatpush3.bf16.msra.mxu1 %v4115_v10  ;;  %3039 = vmatpush1.bf16.msra.mxu0 %v4112_v9 }
  0xbb   : > { %4018 = vmatprep.subr.bf16.mxu1 %v4136_v1  ;;  %3040 = vmatprep.subr.bf16.mxu0 %v4118_v11 }
  0xbc   : > { %4020 = vmatprep.mubr.msk.bf16.mxu1 %vm4137_vm0, %v4136_v1  ;;  %3070 = vmatprep.mubr.bf16.mxu0 %v4138_v5 }
  0xbe   : > { %4019 = vmatpush3.bf16.msra.mxu1 %v4119_v13  ;;  %3041 = vmatpush1.bf16.msra.mxu0 %v4116_v12 }
  0xbf   : > { %4024 = vmatprep.subr.bf16.mxu1 %v4136_v1  ;;  %3163 = vmatprep.subr.bf16.mxu0 %v4122_v14 }
  0xc1   : > { %4021 = vmatmul.mubr.msk.bf16.vlgmr.msra.gmra.mrb[88].mxu1 %vm191_vm1, %v3710_v8  ;;  %3736 = vmatmul.mubr.msk.bf16.vlgmr.msra.gmra.mrb[88].mxu0 %vm191_vm1, %v3710_v8 }
  0xc2   : > { %4025 = vmatpush3.bf16.msra.mxu1 %v4123_v16  ;;  %3164 = vmatpush1.bf16.msra.mxu0 %v4120_v15 }
  0xc3   : > { %4026 = vmatprep.subr.bf16.mxu1 %v4136_v1  ;;  %3165 = vmatprep.subr.bf16.mxu0 %v4126_v17 }
  0xc4   : > { %4028 = vmatprep.mubr.msk.bf16.mxu1 %vm4137_vm0, %v4136_v1  ;;  %3195 = vmatprep.mubr.bf16.mxu0 %v4138_v5 }
  0xc6   : > { %4027 = vmatpush3.bf16.msra.mxu1 %v4127_v19  ;;  %3166 = vmatpush1.bf16.msra.mxu0 %v4124_v18 }
  0xc9   : > { %4029 = vmatmul.mubr.msk.bf16.vlgmr.msra.gmra.mrb[92].mxu1 %vm191_vm1, %v3710_v8  ;;  %3755 = vmatmul.mubr.msk.bf16.vlgmr.msra.gmra.mrb[92].mxu0 %vm191_vm1, %v3710_v8 }
  0xe4   : > { %v270_v20 = vpop.f32.mrb[0].mxu1  ;;  %v229_v21 = vpop.f32.mrb[0].mxu0 }
  0xe5   : > { %279 = vst.msk [vmem:[%s4395_s30 + $0x10] sm:$0x3f] %vm278_vm2, %v270_v20  ;;  %276 = vst [vmem:[%s4395_s30] sm:$0x3f] %v229_v21  ;;  %v3846_v22 = vpop.f32.mrb[1].mxu1  ;;  %v231_v23 = vpop.f32.mrb[1].mxu0 }
  0xe6   : > { %277 = vst [vmem:[%s4395_s30 + $0x8] sm:$0x3f] %v231_v23  ;;  %v273_v1 = vpop.f32.mrb[2].mxu1  ;;  %v233_v24 = vpop.f32.mrb[2].mxu0 }
  0xe7   : > { %v3847_v5 = vpop.f32.mrb[3].mxu1  ;;  %v234_v25 = vpop.f32.mrb[3].mxu0 }
  0xec   : > { %v396_v26 = vpop.f32.mrb[4].mxu1  ;;  %v355_v27 = vpop.f32.mrb[4].mxu0 }
  0xed   : > { %3348 = vst.msk [vmem:[%s4395_s30 + $0x40] sm:$0x3f] %vm278_vm2, %v396_v26  ;;  %3346 = vst [vmem:[%s4395_s30 + $0x30] sm:$0x3f] %v355_v27  ;;  %v3854_v28 = vpop.f32.mrb[5].mxu1  ;;  %v357_v29 = vpop.f32.mrb[5].mxu0 }
  0xee   : > { %3347 = vst [vmem:[%s4395_s30 + $0x38] sm:$0x3f] %v357_v29  ;;  %v399_v30 = vpop.f32.mrb[6].mxu1  ;;  %v359_v31 = vpop.f32.mrb[6].mxu0 }
  0xef   : > { %v3855_v32 = vpop.f32.mrb[7].mxu1  ;;  %v360_v33 = vpop.f32.mrb[7].mxu0 }
  0xf4   : > { %v522_v34 = vpop.f32.mrb[8].mxu1  ;;  %v481_v35 = vpop.f32.mrb[8].mxu0 }
  0xf5   : > { %3367 = vst.msk [vmem:[%s4395_s30 + $0x70] sm:$0x3f] %vm278_vm2, %v522_v34  ;;  %3365 = vst [vmem:[%s4395_s30 + $0x60] sm:$0x3f] %v481_v35  ;;  %v3862_v36 = vpop.f32.mrb[9].mxu1  ;;  %v483_v37 = vpop.f32.mrb[9].mxu0 }
  0xf6   : > { %3366 = vst [vmem:[%s4395_s30 + $0x68] sm:$0x3f] %v483_v37  ;;  %v525_v38 = vpop.f32.mrb[10].mxu1  ;;  %v485_v39 = vpop.f32.mrb[10].mxu0 }
  0xf7   : > { %v3863_v40 = vpop.f32.mrb[11].mxu1  ;;  %v486_v41 = vpop.f32.mrb[11].mxu0 }
  0xfc   : > { %v660_v42 = vpop.f32.mrb[12].mxu1  ;;  %v619_v43 = vpop.f32.mrb[12].mxu0 }
  0xfd   : > { %3385 = vst.msk [vmem:[%s4395_s30 + $0x88] sm:$0x3f] %vm278_vm2, %v660_v42  ;;  %3383 = vst [vmem:[%s4395_s30 + $0x78] sm:$0x3f] %v619_v43  ;;  %v3870_v44 = vpop.f32.mrb[13].mxu1  ;;  %v621_v45 = vpop.f32.mrb[13].mxu0 }
  0xfe   : > { %3384 = vst [vmem:[%s4395_s30 + $0x80] sm:$0x3f] %v621_v45  ;;  %v663_v46 = vpop.f32.mrb[14].mxu1  ;;  %v623_v47 = vpop.f32.mrb[14].mxu0 }
  0xff   : > { %v3871_v48 = vpop.f32.mrb[15].mxu1  ;;  %v624_v49 = vpop.f32.mrb[15].mxu0 }
 0x104   : > { %v785_v50 = vpop.f32.mrb[16].mxu1  ;;  %v744_v51 = vpop.f32.mrb[16].mxu0 }
 0x105   : > { %3404 = vst.msk [vmem:[%s4395_s30 + $0xb8] sm:$0x3f] %vm278_vm2, %v785_v50  ;;  %3402 = vst [vmem:[%s4395_s30 + $0xa8] sm:$0x3f] %v744_v51  ;;  %v3878_v52 = vpop.f32.mrb[17].mxu1  ;;  %v746_v53 = vpop.f32.mrb[17].mxu0 }
 0x106   : > { %3403 = vst [vmem:[%s4395_s30 + $0xb0] sm:$0x3f] %v746_v53  ;;  %v788_v54 = vpop.f32.mrb[18].mxu1  ;;  %v748_v55 = vpop.f32.mrb[18].mxu0 }
 0x107   : > { %v3879_v56 = vpop.f32.mrb[19].mxu1  ;;  %v749_v57 = vpop.f32.mrb[19].mxu0 }
 0x10c   : > { %v910_v58 = vpop.f32.mrb[20].mxu1  ;;  %v869_v59 = vpop.f32.mrb[20].mxu0 }
 0x10d   : > { %3423 = vst.msk [vmem:[%s4395_s30 + $0xe8] sm:$0x3f] %vm278_vm2, %v910_v58  ;;  %3421 = vst [vmem:[%s4395_s30 + $0xd8] sm:$0x3f] %v869_v59  ;;  %v3886_v60 = vpop.f32.mrb[21].mxu1  ;;  %v871_v61 = vpop.f32.mrb[21].mxu0 }
 0x10e   : > { %3422 = vst [vmem:[%s4395_s30 + $0xe0] sm:$0x3f] %v871_v61  ;;  %v913_v62 = vpop.f32.mrb[22].mxu1  ;;  %v873_v63 = vpop.f32.mrb[22].mxu0 }
 0x10f   : > { %v3887_v0 = vpop.f32.mrb[23].mxu1  ;;  %v874_v2 = vpop.f32.mrb[23].mxu0 }
 0x114   : > { %v1048_v3 = vpop.f32.mrb[24].mxu1  ;;  %v1007_v4 = vpop.f32.mrb[24].mxu0 }
 0x115   : > { %3441 = vst.msk [vmem:[%s4395_s30 + $0x100] sm:$0x3f] %vm278_vm2, %v1048_v3  ;;  %3439 = vst [vmem:[%s4395_s30 + $0xf0] sm:$0x3f] %v1007_v4  ;;  %v3894_v6 = vpop.f32.mrb[25].mxu1  ;;  %v1009_v7 = vpop.f32.mrb[25].mxu0 }
 0x116   : > { %3440 = vst [vmem:[%s4395_s30 + $0xf8] sm:$0x3f] %v1009_v7  ;;  %v1051_v8 = vpop.f32.mrb[26].mxu1  ;;  %v1011_v9 = vpop.f32.mrb[26].mxu0 }
 0x117   : > { %v3895_v10 = vpop.f32.mrb[27].mxu1  ;;  %v1012_v11 = vpop.f32.mrb[27].mxu0 }
 0x11c   : > { %v1173_v12 = vpop.f32.mrb[28].mxu1  ;;  %v1132_v13 = vpop.f32.mrb[28].mxu0 }
 0x11d   : > { %3460 = vst.msk [vmem:[%s4395_s30 + $0x130] sm:$0x3f] %vm278_vm2, %v1173_v12  ;;  %3458 = vst [vmem:[%s4395_s30 + $0x120] sm:$0x3f] %v1132_v13  ;;  %v3902_v14 = vpop.f32.mrb[29].mxu1  ;;  %v1134_v15 = vpop.f32.mrb[29].mxu0 }
 0x11e   : > { %3459 = vst [vmem:[%s4395_s30 + $0x128] sm:$0x3f] %v1134_v15  ;;  %v1176_v16 = vpop.f32.mrb[30].mxu1  ;;  %v1136_v17 = vpop.f32.mrb[30].mxu0 }
 0x11f   : > { %v3903_v18 = vpop.f32.mrb[31].mxu1  ;;  %v1137_v19 = vpop.f32.mrb[31].mxu0 }
 0x124   : > { %v1298_v20 = vpop.f32.mrb[32].mxu1  ;;  %v1257_v21 = vpop.f32.mrb[32].mxu0 }
 0x125   : > { %3479 = vst.msk [vmem:[%s4395_s30 + $0x160] sm:$0x3f] %vm278_vm2, %v1298_v20  ;;  %3477 = vst [vmem:[%s4395_s30 + $0x150] sm:$0x3f] %v1257_v21  ;;  %v3910_v22 = vpop.f32.mrb[33].mxu1  ;;  %v1259_v23 = vpop.f32.mrb[33].mxu0 }
 0x126   : > { %3478 = vst [vmem:[%s4395_s30 + $0x158] sm:$0x3f] %v1259_v23  ;;  %v1301_v1 = vpop.f32.mrb[34].mxu1  ;;  %v1261_v24 = vpop.f32.mrb[34].mxu0 }
 0x127   : > { %v3911_v5 = vpop.f32.mrb[35].mxu1  ;;  %v1262_v25 = vpop.f32.mrb[35].mxu0 }
 0x12c   : > { %v1436_v26 = vpop.f32.mrb[36].mxu1  ;;  %v1395_v27 = vpop.f32.mrb[36].mxu0 }
 0x12d   : > { %3497 = vst.msk [vmem:[%s4395_s30 + $0x178] sm:$0x3f] %vm278_vm2, %v1436_v26  ;;  %3495 = vst [vmem:[%s4395_s30 + $0x168] sm:$0x3f] %v1395_v27  ;;  %v3918_v28 = vpop.f32.mrb[37].mxu1  ;;  %v1397_v29 = vpop.f32.mrb[37].mxu0 }
 0x12e   : > { %3496 = vst [vmem:[%s4395_s30 + $0x170] sm:$0x3f] %v1397_v29  ;;  %v1439_v30 = vpop.f32.mrb[38].mxu1  ;;  %v1399_v31 = vpop.f32.mrb[38].mxu0 }
 0x12f   : > { %v3919_v32 = vpop.f32.mrb[39].mxu1  ;;  %v1400_v33 = vpop.f32.mrb[39].mxu0 }
 0x134   : > { %v1561_v34 = vpop.f32.mrb[40].mxu1  ;;  %v1520_v35 = vpop.f32.mrb[40].mxu0 }
 0x135   : > { %3516 = vst.msk [vmem:[%s4395_s30 + $0x1a8] sm:$0x3f] %vm278_vm2, %v1561_v34  ;;  %3514 = vst [vmem:[%s4395_s30 + $0x198] sm:$0x3f] %v1520_v35  ;;  %v3926_v36 = vpop.f32.mrb[41].mxu1  ;;  %v1522_v37 = vpop.f32.mrb[41].mxu0 }
 0x136   : > { %3515 = vst [vmem:[%s4395_s30 + $0x1a0] sm:$0x3f] %v1522_v37  ;;  %v1564_v38 = vpop.f32.mrb[42].mxu1  ;;  %v1524_v39 = vpop.f32.mrb[42].mxu0 }
 0x137   : > { %v3927_v40 = vpop.f32.mrb[43].mxu1  ;;  %v1525_v41 = vpop.f32.mrb[43].mxu0 }
 0x13c   : > { %v1686_v42 = vpop.f32.mrb[44].mxu1  ;;  %v1645_v43 = vpop.f32.mrb[44].mxu0 }
 0x13d   : > { %3535 = vst.msk [vmem:[%s4395_s30 + $0x1d8] sm:$0x3f] %vm278_vm2, %v1686_v42  ;;  %3533 = vst [vmem:[%s4395_s30 + $0x1c8] sm:$0x3f] %v1645_v43  ;;  %v3934_v44 = vpop.f32.mrb[45].mxu1  ;;  %v1647_v45 = vpop.f32.mrb[45].mxu0 }
 0x13e   : > { %3534 = vst [vmem:[%s4395_s30 + $0x1d0] sm:$0x3f] %v1647_v45  ;;  %v1689_v46 = vpop.f32.mrb[46].mxu1  ;;  %v1649_v47 = vpop.f32.mrb[46].mxu0 }
 0x13f   : > { %v3935_v48 = vpop.f32.mrb[47].mxu1  ;;  %v1650_v49 = vpop.f32.mrb[47].mxu0 }
 0x144   : > { %v1824_v50 = vpop.f32.mrb[48].mxu1  ;;  %v1783_v51 = vpop.f32.mrb[48].mxu0 }
 0x145   : > { %3553 = vst.msk [vmem:[%s4395_s30 + $0x1f0] sm:$0x3f] %vm278_vm2, %v1824_v50  ;;  %3551 = vst [vmem:[%s4395_s30 + $0x1e0] sm:$0x3f] %v1783_v51  ;;  %v3942_v52 = vpop.f32.mrb[49].mxu1  ;;  %v1785_v53 = vpop.f32.mrb[49].mxu0 }
 0x146   : > { %3552 = vst [vmem:[%s4395_s30 + $0x1e8] sm:$0x3f] %v1785_v53  ;;  %v1827_v54 = vpop.f32.mrb[50].mxu1  ;;  %v1787_v55 = vpop.f32.mrb[50].mxu0 }
 0x147   : > { %v3943_v56 = vpop.f32.mrb[51].mxu1  ;;  %v1788_v57 = vpop.f32.mrb[51].mxu0 }
 0x14c   : > { %v1949_v58 = vpop.f32.mrb[52].mxu1  ;;  %v1908_v59 = vpop.f32.mrb[52].mxu0 }
 0x14d   : > { %3572 = vst.msk [vmem:[%s4395_s30 + $0x220] sm:$0x3f] %vm278_vm2, %v1949_v58  ;;  %3570 = vst [vmem:[%s4395_s30 + $0x210] sm:$0x3f] %v1908_v59  ;;  %v3950_v60 = vpop.f32.mrb[53].mxu1  ;;  %v1910_v61 = vpop.f32.mrb[53].mxu0 }
 0x14e   : > { %3571 = vst [vmem:[%s4395_s30 + $0x218] sm:$0x3f] %v1910_v61  ;;  %v1952_v62 = vpop.f32.mrb[54].mxu1  ;;  %v1912_v63 = vpop.f32.mrb[54].mxu0 }
 0x14f   : > { %v3951_v0 = vpop.f32.mrb[55].mxu1  ;;  %v1913_v2 = vpop.f32.mrb[55].mxu0 }
 0x154   : > { %v2074_v3 = vpop.f32.mrb[56].mxu1  ;;  %v2033_v4 = vpop.f32.mrb[56].mxu0 }
 0x155   : > { %3591 = vst.msk [vmem:[%s4395_s30 + $0x250] sm:$0x3f] %vm278_vm2, %v2074_v3  ;;  %3589 = vst [vmem:[%s4395_s30 + $0x240] sm:$0x3f] %v2033_v4  ;;  %v3958_v6 = vpop.f32.mrb[57].mxu1  ;;  %v2035_v7 = vpop.f32.mrb[57].mxu0 }
 0x156   : > { %3590 = vst [vmem:[%s4395_s30 + $0x248] sm:$0x3f] %v2035_v7  ;;  %v2077_v8 = vpop.f32.mrb[58].mxu1  ;;  %v2037_v9 = vpop.f32.mrb[58].mxu0 }
 0x157   : > { %v3959_v10 = vpop.f32.mrb[59].mxu1  ;;  %v2038_v11 = vpop.f32.mrb[59].mxu0 }
 0x15c   : > { %v2212_v12 = vpop.f32.mrb[60].mxu1  ;;  %v2171_v13 = vpop.f32.mrb[60].mxu0 }
 0x15d   : > { %3609 = vst.msk [vmem:[%s4395_s30 + $0x268] sm:$0x3f] %vm278_vm2, %v2212_v12  ;;  %3607 = vst [vmem:[%s4395_s30 + $0x258] sm:$0x3f] %v2171_v13  ;;  %v3966_v14 = vpop.f32.mrb[61].mxu1  ;;  %v2173_v15 = vpop.f32.mrb[61].mxu0 }
 0x15e   : > { %3608 = vst [vmem:[%s4395_s30 + $0x260] sm:$0x3f] %v2173_v15  ;;  %v2215_v16 = vpop.f32.mrb[62].mxu1  ;;  %v2175_v17 = vpop.f32.mrb[62].mxu0 }
 0x15f   : > { %v3967_v18 = vpop.f32.mrb[63].mxu1  ;;  %v2176_v19 = vpop.f32.mrb[63].mxu0 }
 0x164   : > { %v2337_v20 = vpop.f32.mrb[64].mxu1  ;;  %v2296_v21 = vpop.f32.mrb[64].mxu0 }
 0x165   : > { %3628 = vst.msk [vmem:[%s4395_s30 + $0x298] sm:$0x3f] %vm278_vm2, %v2337_v20  ;;  %3626 = vst [vmem:[%s4395_s30 + $0x288] sm:$0x3f] %v2296_v21  ;;  %v3974_v22 = vpop.f32.mrb[65].mxu1  ;;  %v2298_v23 = vpop.f32.mrb[65].mxu0 }
 0x166   : > { %3627 = vst [vmem:[%s4395_s30 + $0x290] sm:$0x3f] %v2298_v23  ;;  %v2340_v1 = vpop.f32.mrb[66].mxu1  ;;  %v2300_v24 = vpop.f32.mrb[66].mxu0 }
 0x167   : > { %v3975_v5 = vpop.f32.mrb[67].mxu1  ;;  %v2301_v25 = vpop.f32.mrb[67].mxu0 }
 0x16c   : > { %v2462_v26 = vpop.f32.mrb[68].mxu1  ;;  %v2421_v27 = vpop.f32.mrb[68].mxu0 }
 0x16d   : > { %3647 = vst.msk [vmem:[%s4395_s30 + $0x2c8] sm:$0x3f] %vm278_vm2, %v2462_v26  ;;  %3645 = vst [vmem:[%s4395_s30 + $0x2b8] sm:$0x3f] %v2421_v27  ;;  %v3982_v28 = vpop.f32.mrb[69].mxu1  ;;  %v2423_v29 = vpop.f32.mrb[69].mxu0 }
 0x16e   : > { %3646 = vst [vmem:[%s4395_s30 + $0x2c0] sm:$0x3f] %v2423_v29  ;;  %v2465_v30 = vpop.f32.mrb[70].mxu1  ;;  %v2425_v31 = vpop.f32.mrb[70].mxu0 }
 0x16f   : > { %v3983_v32 = vpop.f32.mrb[71].mxu1  ;;  %v2426_v33 = vpop.f32.mrb[71].mxu0 }
 0x174   : > { %v2600_v34 = vpop.f32.mrb[72].mxu1  ;;  %v2559_v35 = vpop.f32.mrb[72].mxu0 }
 0x175   : > { %3665 = vst.msk [vmem:[%s4395_s30 + $0x2e0] sm:$0x3f] %vm278_vm2, %v2600_v34  ;;  %3663 = vst [vmem:[%s4395_s30 + $0x2d0] sm:$0x3f] %v2559_v35  ;;  %v3990_v36 = vpop.f32.mrb[73].mxu1  ;;  %v2561_v37 = vpop.f32.mrb[73].mxu0 }
 0x176   : > { %3664 = vst [vmem:[%s4395_s30 + $0x2d8] sm:$0x3f] %v2561_v37  ;;  %v2603_v38 = vpop.f32.mrb[74].mxu1  ;;  %v2563_v39 = vpop.f32.mrb[74].mxu0 }
 0x177   : > { %v3991_v40 = vpop.f32.mrb[75].mxu1  ;;  %v2564_v41 = vpop.f32.mrb[75].mxu0 }
 0x17c   : > { %v2725_v42 = vpop.f32.mrb[76].mxu1  ;;  %v2684_v43 = vpop.f32.mrb[76].mxu0 }
 0x17d   : > { %3684 = vst.msk [vmem:[%s4395_s30 + $0x310] sm:$0x3f] %vm278_vm2, %v2725_v42  ;;  %3682 = vst [vmem:[%s4395_s30 + $0x300] sm:$0x3f] %v2684_v43  ;;  %v3998_v44 = vpop.f32.mrb[77].mxu1  ;;  %v2686_v45 = vpop.f32.mrb[77].mxu0 }
 0x17e   : > { %3683 = vst [vmem:[%s4395_s30 + $0x308] sm:$0x3f] %v2686_v45  ;;  %v2728_v46 = vpop.f32.mrb[78].mxu1  ;;  %v2688_v47 = vpop.f32.mrb[78].mxu0 }
 0x17f   : > { %v3999_v48 = vpop.f32.mrb[79].mxu1  ;;  %v2689_v49 = vpop.f32.mrb[79].mxu0 }
 0x184   : > { %v2850_v50 = vpop.f32.mrb[80].mxu1  ;;  %v2809_v51 = vpop.f32.mrb[80].mxu0 }
 0x185   : > { %3703 = vst.msk [vmem:[%s4395_s30 + $0x340] sm:$0x3f] %vm278_vm2, %v2850_v50  ;;  %3701 = vst [vmem:[%s4395_s30 + $0x330] sm:$0x3f] %v2809_v51  ;;  %v4006_v52 = vpop.f32.mrb[81].mxu1  ;;  %v2811_v53 = vpop.f32.mrb[81].mxu0 }
 0x186   : > { %3702 = vst [vmem:[%s4395_s30 + $0x338] sm:$0x3f] %v2811_v53  ;;  %v2853_v54 = vpop.f32.mrb[82].mxu1  ;;  %v2813_v55 = vpop.f32.mrb[82].mxu0 }
 0x187   : > { %v4007_v56 = vpop.f32.mrb[83].mxu1  ;;  %v2814_v57 = vpop.f32.mrb[83].mxu0 }
 0x18c   : > { %v2988_v58 = vpop.f32.mrb[84].mxu1  ;;  %v2947_v59 = vpop.f32.mrb[84].mxu0 }
 0x18d   : > { %3721 = vst.msk [vmem:[%s4395_s30 + $0x358] sm:$0x3f] %vm278_vm2, %v2988_v58  ;;  %3719 = vst [vmem:[%s4395_s30 + $0x348] sm:$0x3f] %v2947_v59  ;;  %v4014_v60 = vpop.f32.mrb[85].mxu1  ;;  %v2949_v61 = vpop.f32.mrb[85].mxu0 }
 0x18e   : > { %3720 = vst [vmem:[%s4395_s30 + $0x350] sm:$0x3f] %v2949_v61  ;;  %v2991_v62 = vpop.f32.mrb[86].mxu1  ;;  %v2951_v63 = vpop.f32.mrb[86].mxu0 }
 0x18f   : > { %v4015_v0 = vpop.f32.mrb[87].mxu1  ;;  %v2952_v2 = vpop.f32.mrb[87].mxu0 }
 0x194   : > { %v3113_v3 = vpop.f32.mrb[88].mxu1  ;;  %v3072_v4 = vpop.f32.mrb[88].mxu0 }
 0x195   : > { %3740 = vst.msk [vmem:[%s4395_s30 + $0x388] sm:$0x3f] %vm278_vm2, %v3113_v3  ;;  %3738 = vst [vmem:[%s4395_s30 + $0x378] sm:$0x3f] %v3072_v4  ;;  %v4022_v6 = vpop.f32.mrb[89].mxu1  ;;  %v3074_v7 = vpop.f32.mrb[89].mxu0 }
 0x196   : > { %3739 = vst [vmem:[%s4395_s30 + $0x380] sm:$0x3f] %v3074_v7  ;;  %v3116_v8 = vpop.f32.mrb[90].mxu1  ;;  %v3076_v9 = vpop.f32.mrb[90].mxu0 }
 0x197   : > { %v4023_v10 = vpop.f32.mrb[91].mxu1  ;;  %v3077_v11 = vpop.f32.mrb[91].mxu0 }
 0x19c   : > { %v3238_v12 = vpop.f32.mrb[92].mxu1  ;;  %v3197_v13 = vpop.f32.mrb[92].mxu0 }
 0x19d   : > { %3759 = vst.msk [vmem:[%s4395_s30 + $0x3b8] sm:$0x3f] %vm278_vm2, %v3238_v12  ;;  %3757 = vst [vmem:[%s4395_s30 + $0x3a8] sm:$0x3f] %v3197_v13  ;;  %v4030_v14 = vpop.f32.mrb[93].mxu1  ;;  %v3199_v15 = vpop.f32.mrb[93].mxu0 }
 0x19e   : > { %3758 = vst [vmem:[%s4395_s30 + $0x3b0] sm:$0x3f] %v3199_v15  ;;  %v3241_v16 = vpop.f32.mrb[94].mxu1  ;;  %v3201_v17 = vpop.f32.mrb[94].mxu0 }
 0x19f   : > { %v4031_v18 = vpop.f32.mrb[95].mxu1  ;;  %v3202_v19 = vpop.f32.mrb[95].mxu0 }
 0x1a0 PF: > { %s12_s9 = sadd.s32 1, %s4134_s9  }
 0x1a1   : > { %p9_p5 = scmp.ge.s32.totalorder %s12_s9, 4  }
 0x1a3   :  { %11 = sbr.rel (!%p9_p5) target bundleno = 1 (0x1), region = 106 }

</bundles_post_ra>
